<compile_context>
chip_gen: v5e
topology: v5e:2x2
jax: 0.10.0
libtpu: 0.0.40
codegen_flags: <defaults>
</compile_context>

<pallas_src>
import functools
import numpy as np
import jax
import jax.numpy as jnp
from jax import lax
from jax.experimental import pallas as pl
from jax.experimental.pallas import tpu as pltpu

SCALE = float(np.sqrt(0.5))   # torch.sqrt(FloatTensor([0.5]))
_LANE = 128
_SUB = 8


def _round_up(x, m):
    return (x + m - 1) // m * m


# --------------------------------------------------------------------------
# pltpu.roll sign-convention probe (run once): +1 == jnp.roll semantics,
# -1 == opposite convention, 0 == sublane roll unsupported -> jnp.roll fallback.
# --------------------------------------------------------------------------
_ROLL_SIGN_CACHE = None


def _roll_probe_kernel(o_ref):
    rows = lax.broadcasted_iota(jnp.int32, (8, 128), 0)
    o_ref[...] = pltpu.roll(rows, 1, axis=0)


def _detect_roll_sign():
    global _ROLL_SIGN_CACHE
    if _ROLL_SIGN_CACHE is None:
        sign = 0
        try:
            out = pl.pallas_call(
                _roll_probe_kernel,
                out_shape=jax.ShapeDtypeStruct((8, 128), jnp.int32))()
            v = int(jax.device_get(out)[1, 0])
            if v == 0:
                sign = 1          # pltpu.roll(x, 1)[t] == x[t-1]  (jnp.roll)
            elif v == 2:
                sign = -1         # pltpu.roll(x, 1)[t] == x[t+1]
        except Exception:
            sign = 0
        _ROLL_SIGN_CACHE = sign
    return _ROLL_SIGN_CACHE


def _shift_rows(p, delta, roll_sign):
    """Cyclic row shift: out[t] = p[(t + delta) % M].  delta in {-1, +1}."""
    m = p.shape[0]
    if roll_sign == 0:
        return jnp.roll(p, -delta, axis=0)              # safe (slices + concat)
    return pltpu.roll(p, (-delta * roll_sign) % m, axis=0)   # XLU rotate


# --------------------------------------------------------------------------
# Kernel
# --------------------------------------------------------------------------
def cnn_encoder_kernel(src_ref, pos_ref, w_eh_ref, b_eh_ref,
                       w_conv_ref, b_conv_ref, w_he_ref, b_he_ref,
                       conved_ref, combined_ref, *, true_len, roll_sign):
    Bt, Lp, Ep = src_ref.shape
    Hp = w_eh_ref.shape[1]
    n_layers = w_conv_ref.shape[0] // 6
    M = Bt * Lp
    cdt = w_eh_ref.dtype                       # matmul operand dtype (bf16 / f32)

    # valid-row mask: 1 for positions < true_len, 0 for padded rows.  It is
    # re-applied every layer so padded rows stay exactly zero (the conv taps
    # read them, so they must never pick up bias/GLU values).
    pos_idx = lax.broadcasted_iota(jnp.int32, (Bt, Lp, 1), 1)
    vmask = (pos_idx < true_len).astype(jnp.float32).reshape(M, 1)

    # embedded = dropout(src + positional)    (dropout == identity at inference)
    emb = src_ref[...] + pos_ref[...][None, :, :]                  # (Bt, Lp, Ep) f32
    emb2 = emb.reshape(M, Ep)                                      # free: Lp % 8 == 0

    # transform_emb_hid: Linear(E -> H); all Bt*Lp rows in one MXU pass.
    x = (jnp.dot(emb2.astype(cdt), w_eh_ref[...],
                 preferred_element_type=jnp.float32) + b_eh_ref[...])
    x = x * vmask                                                  # (M, Hp), pad rows = 0

    def layer_body(i, x):
        xc = x.astype(cdt)                     # ONE activation cast per layer
        base = i * 6                           # [a | gate] x [prev | mid | next]

        def tap(j):
            return jnp.dot(xc, w_conv_ref[base + j],
                           preferred_element_type=jnp.float32)

        # Conv1d(k=3, pad=1): shift the per-tap matmul *outputs* instead of
        # copying shifted inputs.  Padded rows are zero, so the wrapped-around
        # values at sequence edges are zero and no edge masking is needed.
        y_a = (_shift_rows(tap(0), -1, roll_sign) + tap(1)
               + _shift_rows(tap(2), +1, roll_sign) + b_conv_ref[2 * i])
        y_g = (_shift_rows(tap(3), -1, roll_sign) + tap(4)
               + _shift_rows(tap(5), +1, roll_sign) + b_conv_ref[2 * i + 1])
        glu = y_a * jax.nn.sigmoid(y_g)                            # F.glu over channels
        return (glu + x) * SCALE * vmask                           # residual + re-zero pads

    x = lax.fori_loop(0, n_layers, layer_body, x, unroll=(n_layers <= 4))

    # transform_hid_emb: Linear(H -> E)
    conved2 = (jnp.dot(x.astype(cdt), w_he_ref[...],
                       preferred_element_type=jnp.float32) + b_he_ref[...])

    conved_ref[...] = conved2.reshape(Bt, Lp, Ep).astype(conved_ref.dtype)
    combined_ref[...] = ((conved2 + emb2) * SCALE).reshape(Bt, Lp, Ep).astype(
        combined_ref.dtype)


# --------------------------------------------------------------------------
# Wrapper
# --------------------------------------------------------------------------
def _pick_batch_tile(B, Lp, Ep, Hp, weight_bytes, vmem_budget):
    # rough per-row VMEM cost: double-buffered src + 2 outputs (f32, Ep lanes)
    # plus the f32 activation working set (~x, tap products, y_a/y_g).
    per_row = 4 * (3 * Ep * 2 + Ep + 6 * Hp)
    avail = max(vmem_budget - 2 * weight_bytes, per_row * 64)
    rows_fit = max(_SUB, avail // per_row)
    rows_target = min(2048, rows_fit)            # amortize ~0.35us per grid step
    bt = max(1, min(B, rows_target // Lp))
    if B >= 2:
        bt = min(bt, -(-B // 2))                 # >= 2 grid steps (v7x has 2 TCs)
    return bt


def cnn_encoder_forward(src, pos_table, w_eh_t, b_eh, conv_w, conv_b,
                        w_he_t, b_he, *, compute_dtype=jnp.bfloat16,
                        out_dtype=jnp.float32, batch_tile=None):
    """CNN_Encoder forward (3-D float `src` branch).

    PyTorch layouts:
      src       (B, L, E)          already-embedded source
      pos_table (>=L, E)           position_source_emb.weight
      w_eh_t    (H, E), b_eh (H,)  transform_emb_hid
      conv_w    (NL, 2H, H, 3)     stacked Conv1d weights
      conv_b    (NL, 2H)           stacked Conv1d biases
      w_he_t    (E, H), b_he (E,)  transform_hid_emb
    Returns (conved, (conved + embedded) * sqrt(0.5)), each (B, L, E).
    """
    B, L, E = src.shape
    H = w_eh_t.shape[0]
    NL = conv_w.shape[0]
    f32 = jnp.float32

    Ep = _round_up(E, _LANE)
    Hp = _round_up(H, _LANE)
    Lp = _round_up(L + 1, _SUB)        # >=1 guaranteed-zero row per sequence

    # ---- lane/sublane-pad activations (zeros) ----
    src_p = jnp.pad(src.astype(f32), ((0, 0), (0, Lp - L), (0, Ep - E)))
    pos_p = jnp.pad(pos_table[:L].astype(f32), ((0, Lp - L), (0, Ep - E)))

    # ---- lane-pad + fuse weights (zero padding keeps padded channels at 0) ----
    w_eh_p = jnp.pad(w_eh_t.T, ((0, Ep - E), (0, Hp - H))).astype(compute_dtype)
    b_eh_p = jnp.pad(b_eh, (0, Hp - H)).reshape(1, Hp).astype(f32)
    w_he_p = jnp.pad(w_he_t.T, ((0, Hp - H), (0, Ep - E))).astype(compute_dtype)
    b_he_p = jnp.pad(b_he, (0, Ep - E)).reshape(1, Ep).astype(f32)

    # Conv weights (NL, 2H, H, 3) -> one (Hp, Hp) matmul per (layer, half, tap),
    # flat index = layer*6 + half*3 + tap  (half 0 = value "a", 1 = gate).
    w_t = jnp.transpose(conv_w, (0, 3, 2, 1))                    # (NL, 3, Hin, 2Hout)
    w_halves = jnp.stack([w_t[..., :H], w_t[..., H:]], axis=1)   # (NL, 2, 3, H, H)
    w_halves = jnp.pad(w_halves,
                       ((0, 0), (0, 0), (0, 0), (0, Hp - H), (0, Hp - H)))
    w_stack = w_halves.reshape(NL * 6, Hp, Hp).astype(compute_dtype)

    b_halves = jnp.stack([conv_b[:, :H], conv_b[:, H:]], axis=1)  # (NL, 2, H)
    b_stack = jnp.pad(b_halves, ((0, 0), (0, 0), (0, Hp - H)))
    b_stack = b_stack.reshape(NL * 2, 1, Hp).astype(f32)

    # ---- per-generation VMEM budget / batch tiling ----
    try:
        vmem_phys = pltpu.get_tpu_info().vmem_capacity_bytes
    except Exception:
        vmem_phys = 128 * 1024 * 1024
    vmem_limit = int(min(int(vmem_phys * 0.8), 100 * 1024 * 1024))

    weight_bytes = int(w_stack.size * w_stack.dtype.itemsize
                       + w_eh_p.size * w_eh_p.dtype.itemsize
                       + w_he_p.size * w_he_p.dtype.itemsize)

    if batch_tile is None:
        batch_tile = _pick_batch_tile(B, Lp, Ep, Hp, weight_bytes, vmem_limit)
    Bt = int(batch_tile)
    Bp = -(-B // Bt) * Bt
    if Bp > B:
        src_p = jnp.pad(src_p, ((0, Bp - B), (0, 0), (0, 0)))

    roll_sign = _detect_roll_sign()

    def build(single_buffer_weights, rsign):
        kern = functools.partial(cnn_encoder_kernel, true_len=L, roll_sign=rsign)

        def wspec(shape):
            kw = {}
            if single_buffer_weights:
                # grid-invariant weights: no need for double buffering.
                kw["pipeline_mode"] = pl.Buffered(1)
            r = len(shape)
            return pl.BlockSpec(shape, lambda b, _r=r: (0,) * _r, **kw)

        grid_spec = pltpu.PrefetchScalarGridSpec(
            num_scalar_prefetch=0,
            grid=(Bp // Bt,),
            in_specs=[
                pl.BlockSpec((Bt, Lp, Ep), lambda b: (b, 0, 0)),  # src tile
                wspec((Lp, Ep)),                                  # positional emb
                wspec((Ep, Hp)), wspec((1, Hp)),                  # transform_emb_hid
                wspec((NL * 6, Hp, Hp)), wspec((NL * 2, 1, Hp)),  # fused conv w / b
                wspec((Hp, Ep)), wspec((1, Ep)),                  # transform_hid_emb
            ],
            out_specs=(
                pl.BlockSpec((Bt, Lp, Ep), lambda b: (b, 0, 0)),  # conved
                pl.BlockSpec((Bt, Lp, Ep), lambda b: (b, 0, 0)),  # (conved+emb)*scale
            ),
        )

        rows = Bp * Lp
        cost = pl.CostEstimate(
            flops=int(2 * rows * (2 * Ep * Hp + NL * 6 * Hp * Hp)),
            transcendentals=int(rows * Hp * NL),
            bytes_accessed=int(4 * rows * Ep * 3 + weight_bytes))

        return pl.pallas_call(
            kern,
            out_shape=(jax.ShapeDtypeStruct((Bp, Lp, Ep), out_dtype),
                       jax.ShapeDtypeStruct((Bp, Lp, Ep), out_dtype)),
            grid_spec=grid_spec,
            compiler_params=pltpu.CompilerParams(
                dimension_semantics=("parallel",),
                vmem_limit_bytes=vmem_limit),
            cost_estimate=cost,
        )

    args = (src_p, pos_p, w_eh_p, b_eh_p, w_stack, b_stack, w_he_p, b_he_p)
    # Fallback ladder: drop single-buffered weights, then the XLU roll, if the
    # running JAX/Mosaic version rejects them (correctness is identical).
    attempts = [(True, roll_sign), (False, roll_sign)]
    if roll_sign != 0:
        attempts.append((False, 0))
    last_err = None
    for single_buf, rsign in attempts:
        try:
            conved_p, combined_p = build(single_buf, rsign)(*args)
            break
        except Exception as e:      # noqa: BLE001 - fall through the ladder
            last_err = e
    else:
        raise last_err

    return conved_p[:B, :L, :E], combined_p[:B, :L, :E]


# --------------------------------------------------------------------------
# Pure-JAX reference (mirrors the PyTorch forward, dropout = identity)
# --------------------------------------------------------------------------
def ref_forward(src, pos_table, w_eh_t, b_eh, conv_w, conv_b, w_he_t, b_he):
    B, L, E = src.shape
    H = w_eh_t.shape[0]
    emb = src + pos_table[:L][None]
    x = emb @ w_eh_t.T + b_eh
    for i in range(conv_w.shape[0]):
        W = conv_w[i]                                  # (2H, H, 3)
        xp = jnp.pad(x, ((0, 0), (1, 1), (0, 0)))
        y = sum(jnp.einsum('blh,oh->blo', xp[:, k:k + L, :], W[:, :, k])
                for k in range(3)) + conv_b[i]
        a, g = y[..., :H], y[..., H:]
        x = (a * jax.nn.sigmoid(g) + x) * SCALE
    conved = x @ w_he_t.T + b_he
    return conved, (conved + emb) * SCALE


if __name__ == "__main__":
    # Small shapes consistent with the module's 3-D float-input branch.
    B, L = 2, 8
    E = 32      # embedding_dimension
    H = 32      # hidden_output_dimension
    NL = 2      # convolution_layers

    key = jax.random.PRNGKey(0)
    ks = jax.random.split(key, 8)
    src = jax.random.normal(ks[0], (B, L, E), jnp.float32)
    pos_table = 0.02 * jax.random.normal(ks[1], (120, E), jnp.float32)
    w_eh_t = 0.1 * jax.random.normal(ks[2], (H, E), jnp.float32)
    b_eh = 0.1 * jax.random.normal(ks[3], (H,), jnp.float32)
    w_he_t = 0.1 * jax.random.normal(ks[4], (E, H), jnp.float32)
    b_he = 0.1 * jax.random.normal(ks[5], (E,), jnp.float32)
    conv_w = 0.1 * jax.random.normal(ks[6], (NL, 2 * H, H, 3), jnp.float32)
    conv_b = 0.1 * jax.random.normal(ks[7], (NL, 2 * H), jnp.float32)

    ref_conved, ref_combined = ref_forward(
        src, pos_table, w_eh_t, b_eh, conv_w, conv_b, w_he_t, b_he)

    # Default path: bf16 MXU operands, f32 accumulation — loose tolerance.
    conved, combined = cnn_encoder_forward(
        src, pos_table, w_eh_t, b_eh, conv_w, conv_b, w_he_t, b_he)
    jax.block_until_ready((conved, combined))
    np.testing.assert_allclose(np.asarray(conved), np.asarray(ref_conved),
                               rtol=1e-1, atol=1e-1)
    np.testing.assert_allclose(np.asarray(combined), np.asarray(ref_combined),
                               rtol=1e-1, atol=1e-1)

    # f32 operands — tight tolerance (exact algorithmic check).
    conved32, combined32 = cnn_encoder_forward(
        src, pos_table, w_eh_t, b_eh, conv_w, conv_b, w_he_t, b_he,
        compute_dtype=jnp.float32)
    jax.block_until_ready((conved32, combined32))
    np.testing.assert_allclose(np.asarray(conved32), np.asarray(ref_conved),
                               rtol=1e-5, atol=1e-5)
    np.testing.assert_allclose(np.asarray(combined32), np.asarray(ref_combined),
                               rtol=1e-5, atol=1e-5)

    print("KERNEL_OK")
</pallas_src>

<mosaic_0001>
module attributes {stable_mosaic.version = 11 : i64} {
  func.func @cnn_encoder_kernel(%arg0: i32, %arg1: memref<1x16x128xf32, #tpu.memory_space<vmem>>, %arg2: memref<16x128xf32, #tpu.memory_space<vmem>>, %arg3: memref<128x128xbf16, #tpu.memory_space<vmem>>, %arg4: memref<1x128xf32, #tpu.memory_space<vmem>>, %arg5: memref<12x128x128xbf16, #tpu.memory_space<vmem>>, %arg6: memref<4x1x128xf32, #tpu.memory_space<vmem>>, %arg7: memref<128x128xbf16, #tpu.memory_space<vmem>>, %arg8: memref<1x128xf32, #tpu.memory_space<vmem>>, %arg9: memref<1x16x128xf32, #tpu.memory_space<vmem>>, %arg10: memref<1x16x128xf32, #tpu.memory_space<vmem>>) attributes {dimension_semantics = [#tpu.dimension_semantics<parallel>], iteration_bounds = array<i64: 2>, scalar_prefetch = 0 : i64, scratch_operands = 0 : i64, tpu.core_type = #tpu.core_type<tc>, window_params = [{transform_indices = @transform_0, window_bounds = array<i64: 1, 16, 128>}, {pipeline_mode = #tpu.pipeline_mode<synchronous>, transform_indices = @transform_1, window_bounds = array<i64: 16, 128>}, {pipeline_mode = #tpu.pipeline_mode<synchronous>, transform_indices = @transform_2, window_bounds = array<i64: 128, 128>}, {pipeline_mode = #tpu.pipeline_mode<synchronous>, transform_indices = @transform_3, window_bounds = array<i64: 1, 128>}, {pipeline_mode = #tpu.pipeline_mode<synchronous>, transform_indices = @transform_4, window_bounds = array<i64: 12, 128, 128>}, {pipeline_mode = #tpu.pipeline_mode<synchronous>, transform_indices = @transform_5, window_bounds = array<i64: 4, 1, 128>}, {pipeline_mode = #tpu.pipeline_mode<synchronous>, transform_indices = @transform_6, window_bounds = array<i64: 128, 128>}, {pipeline_mode = #tpu.pipeline_mode<synchronous>, transform_indices = @transform_7, window_bounds = array<i64: 1, 128>}, {transform_indices = @transform_8, window_bounds = array<i64: 1, 16, 128>}, {transform_indices = @transform_9, window_bounds = array<i64: 1, 16, 128>}]} {
    %0 = tpu.iota {dimensions = array<i32: 1>} : vector<1x16x1xi32>
    %c8_i32 = arith.constant 8 : i32
    %1 = vector.broadcast %c8_i32 : i32 to vector<1x16x1xi32>
    %2 = arith.cmpi slt, %0, %1 : vector<1x16x1xi32>
    %3 = arith.extui %2 : vector<1x16x1xi1> to vector<1x16x1xi32>
    %4 = arith.sitofp %3 : vector<1x16x1xi32> to vector<1x16x1xf32>
    %5 = vector.shape_cast %4 : vector<1x16x1xf32> to vector<16x1xf32>
    %c0 = arith.constant 0 : index
    %c0_0 = arith.constant 0 : index
    %c0_1 = arith.constant 0 : index
    %6 = vector.load %arg1[%c0, %c0_0, %c0_1] : memref<1x16x128xf32, #tpu.memory_space<vmem>>, vector<1x16x128xf32>
    %c0_2 = arith.constant 0 : index
    %c0_3 = arith.constant 0 : index
    %7 = vector.load %arg2[%c0_2, %c0_3] : memref<16x128xf32, #tpu.memory_space<vmem>>, vector<16x128xf32>
    %8 = vector.shape_cast %7 : vector<16x128xf32> to vector<1x16x128xf32>
    %9 = arith.addf %6, %8 : vector<1x16x128xf32>
    %10 = vector.shape_cast %9 : vector<1x16x128xf32> to vector<16x128xf32>
    %11 = arith.truncf %10 : vector<16x128xf32> to vector<16x128xbf16>
    %c0_4 = arith.constant 0 : index
    %c0_5 = arith.constant 0 : index
    %12 = vector.load %arg3[%c0_4, %c0_5] : memref<128x128xbf16, #tpu.memory_space<vmem>>, vector<128x128xbf16>
    %cst = arith.constant dense<0.000000e+00> : vector<16x128xf32>
    %13 = tpu.matmul %11, %12, %cst {dimension_numbers = #tpu.dot_dimension_numbers<[1], [0], [0], [1], [0, 0, 1, 1], [], []>} : vector<16x128xbf16>, vector<128x128xbf16>, vector<16x128xf32> -> vector<16x128xf32>
    %c0_6 = arith.constant 0 : index
    %c0_7 = arith.constant 0 : index
    %14 = vector.load %arg4[%c0_6, %c0_7] : memref<1x128xf32, #tpu.memory_space<vmem>>, vector<1x128xf32>
    %15 = vector.broadcast %14 : vector<1x128xf32> to vector<16x128xf32>
    %16 = arith.addf %13, %15 : vector<16x128xf32>
    %17 = vector.broadcast %5 : vector<16x1xf32> to vector<16x128xf32>
    %18 = arith.mulf %16, %17 : vector<16x128xf32>
    %c0_i32 = arith.constant 0 : i32
    %19 = arith.truncf %18 : vector<16x128xf32> to vector<16x128xbf16>
    %c6_i32 = arith.constant 6 : i32
    %20 = arith.muli %c0_i32, %c6_i32 : i32
    %c0_i32_8 = arith.constant 0 : i32
    %21 = arith.addi %20, %c0_i32_8 : i32
    %22 = arith.index_cast %21 : i32 to index
    %c0_9 = arith.constant 0 : index
    %c0_10 = arith.constant 0 : index
    %23 = vector.load %arg5[%22, %c0_9, %c0_10] : memref<12x128x128xbf16, #tpu.memory_space<vmem>>, vector<1x128x128xbf16>
    %24 = vector.shape_cast %23 : vector<1x128x128xbf16> to vector<128x128xbf16>
    %cst_11 = arith.constant dense<0.000000e+00> : vector<16x128xf32>
    %25 = tpu.matmul %19, %24, %cst_11 {dimension_numbers = #tpu.dot_dimension_numbers<[1], [0], [0], [1], [0, 0, 1, 1], [], []>} : vector<16x128xbf16>, vector<128x128xbf16>, vector<16x128xf32> -> vector<16x128xf32>
    %26 = vector.extract_strided_slice %25 {offsets = [15, 0], sizes = [1, 128], strides = [1, 1]} : vector<16x128xf32> to vector<1x128xf32>
    %27 = vector.extract_strided_slice %25 {offsets = [0, 0], sizes = [15, 128], strides = [1, 1]} : vector<16x128xf32> to vector<15x128xf32>
    %28 = tpu.concatenate %26, %27 in 0 : vector<1x128xf32>, vector<15x128xf32> -> vector<16x128xf32>
    %c1_i32 = arith.constant 1 : i32
    %29 = arith.addi %20, %c1_i32 : i32
    %30 = arith.index_cast %29 : i32 to index
    %c0_12 = arith.constant 0 : index
    %c0_13 = arith.constant 0 : index
    %31 = vector.load %arg5[%30, %c0_12, %c0_13] : memref<12x128x128xbf16, #tpu.memory_space<vmem>>, vector<1x128x128xbf16>
    %32 = vector.shape_cast %31 : vector<1x128x128xbf16> to vector<128x128xbf16>
    %cst_14 = arith.constant dense<0.000000e+00> : vector<16x128xf32>
    %33 = tpu.matmul %19, %32, %cst_14 {dimension_numbers = #tpu.dot_dimension_numbers<[1], [0], [0], [1], [0, 0, 1, 1], [], []>} : vector<16x128xbf16>, vector<128x128xbf16>, vector<16x128xf32> -> vector<16x128xf32>
    %34 = arith.addf %28, %33 : vector<16x128xf32>
    %c2_i32 = arith.constant 2 : i32
    %35 = arith.addi %20, %c2_i32 : i32
    %36 = arith.index_cast %35 : i32 to index
    %c0_15 = arith.constant 0 : index
    %c0_16 = arith.constant 0 : index
    %37 = vector.load %arg5[%36, %c0_15, %c0_16] : memref<12x128x128xbf16, #tpu.memory_space<vmem>>, vector<1x128x128xbf16>
    %38 = vector.shape_cast %37 : vector<1x128x128xbf16> to vector<128x128xbf16>
    %cst_17 = arith.constant dense<0.000000e+00> : vector<16x128xf32>
    %39 = tpu.matmul %19, %38, %cst_17 {dimension_numbers = #tpu.dot_dimension_numbers<[1], [0], [0], [1], [0, 0, 1, 1], [], []>} : vector<16x128xbf16>, vector<128x128xbf16>, vector<16x128xf32> -> vector<16x128xf32>
    %40 = vector.extract_strided_slice %39 {offsets = [1, 0], sizes = [15, 128], strides = [1, 1]} : vector<16x128xf32> to vector<15x128xf32>
    %41 = vector.extract_strided_slice %39 {offsets = [0, 0], sizes = [1, 128], strides = [1, 1]} : vector<16x128xf32> to vector<1x128xf32>
    %42 = tpu.concatenate %40, %41 in 0 : vector<15x128xf32>, vector<1x128xf32> -> vector<16x128xf32>
    %43 = arith.addf %34, %42 : vector<16x128xf32>
    %c2_i32_18 = arith.constant 2 : i32
    %44 = arith.muli %c2_i32_18, %c0_i32 : i32
    %45 = arith.index_cast %44 : i32 to index
    %c0_19 = arith.constant 0 : index
    %c0_20 = arith.constant 0 : index
    %46 = vector.load %arg6[%45, %c0_19, %c0_20] : memref<4x1x128xf32, #tpu.memory_space<vmem>>, vector<1x1x128xf32>
    %47 = vector.shape_cast %46 : vector<1x1x128xf32> to vector<1x128xf32>
    %48 = vector.broadcast %47 : vector<1x128xf32> to vector<16x128xf32>
    %49 = arith.addf %43, %48 : vector<16x128xf32>
    %c3_i32 = arith.constant 3 : i32
    %50 = arith.addi %20, %c3_i32 : i32
    %51 = arith.index_cast %50 : i32 to index
    %c0_21 = arith.constant 0 : index
    %c0_22 = arith.constant 0 : index
    %52 = vector.load %arg5[%51, %c0_21, %c0_22] : memref<12x128x128xbf16, #tpu.memory_space<vmem>>, vector<1x128x128xbf16>
    %53 = vector.shape_cast %52 : vector<1x128x128xbf16> to vector<128x128xbf16>
    %cst_23 = arith.constant dense<0.000000e+00> : vector<16x128xf32>
    %54 = tpu.matmul %19, %53, %cst_23 {dimension_numbers = #tpu.dot_dimension_numbers<[1], [0], [0], [1], [0, 0, 1, 1], [], []>} : vector<16x128xbf16>, vector<128x128xbf16>, vector<16x128xf32> -> vector<16x128xf32>
    %55 = vector.extract_strided_slice %54 {offsets = [15, 0], sizes = [1, 128], strides = [1, 1]} : vector<16x128xf32> to vector<1x128xf32>
    %56 = vector.extract_strided_slice %54 {offsets = [0, 0], sizes = [15, 128], strides = [1, 1]} : vector<16x128xf32> to vector<15x128xf32>
    %57 = tpu.concatenate %55, %56 in 0 : vector<1x128xf32>, vector<15x128xf32> -> vector<16x128xf32>
    %c4_i32 = arith.constant 4 : i32
    %58 = arith.addi %20, %c4_i32 : i32
    %59 = arith.index_cast %58 : i32 to index
    %c0_24 = arith.constant 0 : index
    %c0_25 = arith.constant 0 : index
    %60 = vector.load %arg5[%59, %c0_24, %c0_25] : memref<12x128x128xbf16, #tpu.memory_space<vmem>>, vector<1x128x128xbf16>
    %61 = vector.shape_cast %60 : vector<1x128x128xbf16> to vector<128x128xbf16>
    %cst_26 = arith.constant dense<0.000000e+00> : vector<16x128xf32>
    %62 = tpu.matmul %19, %61, %cst_26 {dimension_numbers = #tpu.dot_dimension_numbers<[1], [0], [0], [1], [0, 0, 1, 1], [], []>} : vector<16x128xbf16>, vector<128x128xbf16>, vector<16x128xf32> -> vector<16x128xf32>
    %63 = arith.addf %57, %62 : vector<16x128xf32>
    %c5_i32 = arith.constant 5 : i32
    %64 = arith.addi %20, %c5_i32 : i32
    %65 = arith.index_cast %64 : i32 to index
    %c0_27 = arith.constant 0 : index
    %c0_28 = arith.constant 0 : index
    %66 = vector.load %arg5[%65, %c0_27, %c0_28] : memref<12x128x128xbf16, #tpu.memory_space<vmem>>, vector<1x128x128xbf16>
    %67 = vector.shape_cast %66 : vector<1x128x128xbf16> to vector<128x128xbf16>
    %cst_29 = arith.constant dense<0.000000e+00> : vector<16x128xf32>
    %68 = tpu.matmul %19, %67, %cst_29 {dimension_numbers = #tpu.dot_dimension_numbers<[1], [0], [0], [1], [0, 0, 1, 1], [], []>} : vector<16x128xbf16>, vector<128x128xbf16>, vector<16x128xf32> -> vector<16x128xf32>
    %69 = vector.extract_strided_slice %68 {offsets = [1, 0], sizes = [15, 128], strides = [1, 1]} : vector<16x128xf32> to vector<15x128xf32>
    %70 = vector.extract_strided_slice %68 {offsets = [0, 0], sizes = [1, 128], strides = [1, 1]} : vector<16x128xf32> to vector<1x128xf32>
    %71 = tpu.concatenate %69, %70 in 0 : vector<15x128xf32>, vector<1x128xf32> -> vector<16x128xf32>
    %72 = arith.addf %63, %71 : vector<16x128xf32>
    %c2_i32_30 = arith.constant 2 : i32
    %73 = arith.muli %c2_i32_30, %c0_i32 : i32
    %c1_i32_31 = arith.constant 1 : i32
    %74 = arith.addi %73, %c1_i32_31 : i32
    %75 = arith.index_cast %74 : i32 to index
    %c0_32 = arith.constant 0 : index
    %c0_33 = arith.constant 0 : index
    %76 = vector.load %arg6[%75, %c0_32, %c0_33] : memref<4x1x128xf32, #tpu.memory_space<vmem>>, vector<1x1x128xf32>
    %77 = vector.shape_cast %76 : vector<1x1x128xf32> to vector<1x128xf32>
    %78 = vector.broadcast %77 : vector<1x128xf32> to vector<16x128xf32>
    %79 = arith.addf %72, %78 : vector<16x128xf32>
    %80 = arith.negf %79 : vector<16x128xf32>
    %81 = math.exp %80 : vector<16x128xf32>
    %cst_34 = arith.constant 1.000000e+00 : f32
    %82 = vector.broadcast %cst_34 : f32 to vector<16x128xf32>
    %83 = arith.addf %82, %81 : vector<16x128xf32>
    %84 = arith.divf %82, %83 : vector<16x128xf32>
    %85 = arith.mulf %49, %84 : vector<16x128xf32>
    %86 = arith.addf %85, %18 : vector<16x128xf32>
    %cst_35 = arith.constant 0.707106769 : f32
    %87 = vector.broadcast %cst_35 : f32 to vector<16x128xf32>
    %88 = arith.mulf %86, %87 : vector<16x128xf32>
    %89 = vector.broadcast %5 : vector<16x1xf32> to vector<16x128xf32>
    %90 = arith.mulf %88, %89 : vector<16x128xf32>
    %c1_i32_36 = arith.constant 1 : i32
    %91 = arith.truncf %90 : vector<16x128xf32> to vector<16x128xbf16>
    %c6_i32_37 = arith.constant 6 : i32
    %92 = arith.muli %c1_i32_36, %c6_i32_37 : i32
    %c0_i32_38 = arith.constant 0 : i32
    %93 = arith.addi %92, %c0_i32_38 : i32
    %94 = arith.index_cast %93 : i32 to index
    %c0_39 = arith.constant 0 : index
    %c0_40 = arith.constant 0 : index
    %95 = vector.load %arg5[%94, %c0_39, %c0_40] : memref<12x128x128xbf16, #tpu.memory_space<vmem>>, vector<1x128x128xbf16>
    %96 = vector.shape_cast %95 : vector<1x128x128xbf16> to vector<128x128xbf16>
    %cst_41 = arith.constant dense<0.000000e+00> : vector<16x128xf32>
    %97 = tpu.matmul %91, %96, %cst_41 {dimension_numbers = #tpu.dot_dimension_numbers<[1], [0], [0], [1], [0, 0, 1, 1], [], []>} : vector<16x128xbf16>, vector<128x128xbf16>, vector<16x128xf32> -> vector<16x128xf32>
    %98 = vector.extract_strided_slice %97 {offsets = [15, 0], sizes = [1, 128], strides = [1, 1]} : vector<16x128xf32> to vector<1x128xf32>
    %99 = vector.extract_strided_slice %97 {offsets = [0, 0], sizes = [15, 128], strides = [1, 1]} : vector<16x128xf32> to vector<15x128xf32>
    %100 = tpu.concatenate %98, %99 in 0 : vector<1x128xf32>, vector<15x128xf32> -> vector<16x128xf32>
    %c1_i32_42 = arith.constant 1 : i32
    %101 = arith.addi %92, %c1_i32_42 : i32
    %102 = arith.index_cast %101 : i32 to index
    %c0_43 = arith.constant 0 : index
    %c0_44 = arith.constant 0 : index
    %103 = vector.load %arg5[%102, %c0_43, %c0_44] : memref<12x128x128xbf16, #tpu.memory_space<vmem>>, vector<1x128x128xbf16>
    %104 = vector.shape_cast %103 : vector<1x128x128xbf16> to vector<128x128xbf16>
    %cst_45 = arith.constant dense<0.000000e+00> : vector<16x128xf32>
    %105 = tpu.matmul %91, %104, %cst_45 {dimension_numbers = #tpu.dot_dimension_numbers<[1], [0], [0], [1], [0, 0, 1, 1], [], []>} : vector<16x128xbf16>, vector<128x128xbf16>, vector<16x128xf32> -> vector<16x128xf32>
    %106 = arith.addf %100, %105 : vector<16x128xf32>
    %c2_i32_46 = arith.constant 2 : i32
    %107 = arith.addi %92, %c2_i32_46 : i32
    %108 = arith.index_cast %107 : i32 to index
    %c0_47 = arith.constant 0 : index
    %c0_48 = arith.constant 0 : index
    %109 = vector.load %arg5[%108, %c0_47, %c0_48] : memref<12x128x128xbf16, #tpu.memory_space<vmem>>, vector<1x128x128xbf16>
    %110 = vector.shape_cast %109 : vector<1x128x128xbf16> to vector<128x128xbf16>
    %cst_49 = arith.constant dense<0.000000e+00> : vector<16x128xf32>
    %111 = tpu.matmul %91, %110, %cst_49 {dimension_numbers = #tpu.dot_dimension_numbers<[1], [0], [0], [1], [0, 0, 1, 1], [], []>} : vector<16x128xbf16>, vector<128x128xbf16>, vector<16x128xf32> -> vector<16x128xf32>
    %112 = vector.extract_strided_slice %111 {offsets = [1, 0], sizes = [15, 128], strides = [1, 1]} : vector<16x128xf32> to vector<15x128xf32>
    %113 = vector.extract_strided_slice %111 {offsets = [0, 0], sizes = [1, 128], strides = [1, 1]} : vector<16x128xf32> to vector<1x128xf32>
    %114 = tpu.concatenate %112, %113 in 0 : vector<15x128xf32>, vector<1x128xf32> -> vector<16x128xf32>
    %115 = arith.addf %106, %114 : vector<16x128xf32>
    %c2_i32_50 = arith.constant 2 : i32
    %116 = arith.muli %c2_i32_50, %c1_i32_36 : i32
    %117 = arith.index_cast %116 : i32 to index
    %c0_51 = arith.constant 0 : index
    %c0_52 = arith.constant 0 : index
    %118 = vector.load %arg6[%117, %c0_51, %c0_52] : memref<4x1x128xf32, #tpu.memory_space<vmem>>, vector<1x1x128xf32>
    %119 = vector.shape_cast %118 : vector<1x1x128xf32> to vector<1x128xf32>
    %120 = vector.broadcast %119 : vector<1x128xf32> to vector<16x128xf32>
    %121 = arith.addf %115, %120 : vector<16x128xf32>
    %c3_i32_53 = arith.constant 3 : i32
    %122 = arith.addi %92, %c3_i32_53 : i32
    %123 = arith.index_cast %122 : i32 to index
    %c0_54 = arith.constant 0 : index
    %c0_55 = arith.constant 0 : index
    %124 = vector.load %arg5[%123, %c0_54, %c0_55] : memref<12x128x128xbf16, #tpu.memory_space<vmem>>, vector<1x128x128xbf16>
    %125 = vector.shape_cast %124 : vector<1x128x128xbf16> to vector<128x128xbf16>
    %cst_56 = arith.constant dense<0.000000e+00> : vector<16x128xf32>
    %126 = tpu.matmul %91, %125, %cst_56 {dimension_numbers = #tpu.dot_dimension_numbers<[1], [0], [0], [1], [0, 0, 1, 1], [], []>} : vector<16x128xbf16>, vector<128x128xbf16>, vector<16x128xf32> -> vector<16x128xf32>
    %127 = vector.extract_strided_slice %126 {offsets = [15, 0], sizes = [1, 128], strides = [1, 1]} : vector<16x128xf32> to vector<1x128xf32>
    %128 = vector.extract_strided_slice %126 {offsets = [0, 0], sizes = [15, 128], strides = [1, 1]} : vector<16x128xf32> to vector<15x128xf32>
    %129 = tpu.concatenate %127, %128 in 0 : vector<1x128xf32>, vector<15x128xf32> -> vector<16x128xf32>
    %c4_i32_57 = arith.constant 4 : i32
    %130 = arith.addi %92, %c4_i32_57 : i32
    %131 = arith.index_cast %130 : i32 to index
    %c0_58 = arith.constant 0 : index
    %c0_59 = arith.constant 0 : index
    %132 = vector.load %arg5[%131, %c0_58, %c0_59] : memref<12x128x128xbf16, #tpu.memory_space<vmem>>, vector<1x128x128xbf16>
    %133 = vector.shape_cast %132 : vector<1x128x128xbf16> to vector<128x128xbf16>
    %cst_60 = arith.constant dense<0.000000e+00> : vector<16x128xf32>
    %134 = tpu.matmul %91, %133, %cst_60 {dimension_numbers = #tpu.dot_dimension_numbers<[1], [0], [0], [1], [0, 0, 1, 1], [], []>} : vector<16x128xbf16>, vector<128x128xbf16>, vector<16x128xf32> -> vector<16x128xf32>
    %135 = arith.addf %129, %134 : vector<16x128xf32>
    %c5_i32_61 = arith.constant 5 : i32
    %136 = arith.addi %92, %c5_i32_61 : i32
    %137 = arith.index_cast %136 : i32 to index
    %c0_62 = arith.constant 0 : index
    %c0_63 = arith.constant 0 : index
    %138 = vector.load %arg5[%137, %c0_62, %c0_63] : memref<12x128x128xbf16, #tpu.memory_space<vmem>>, vector<1x128x128xbf16>
    %139 = vector.shape_cast %138 : vector<1x128x128xbf16> to vector<128x128xbf16>
    %cst_64 = arith.constant dense<0.000000e+00> : vector<16x128xf32>
    %140 = tpu.matmul %91, %139, %cst_64 {dimension_numbers = #tpu.dot_dimension_numbers<[1], [0], [0], [1], [0, 0, 1, 1], [], []>} : vector<16x128xbf16>, vector<128x128xbf16>, vector<16x128xf32> -> vector<16x128xf32>
    %141 = vector.extract_strided_slice %140 {offsets = [1, 0], sizes = [15, 128], strides = [1, 1]} : vector<16x128xf32> to vector<15x128xf32>
    %142 = vector.extract_strided_slice %140 {offsets = [0, 0], sizes = [1, 128], strides = [1, 1]} : vector<16x128xf32> to vector<1x128xf32>
    %143 = tpu.concatenate %141, %142 in 0 : vector<15x128xf32>, vector<1x128xf32> -> vector<16x128xf32>
    %144 = arith.addf %135, %143 : vector<16x128xf32>
    %c2_i32_65 = arith.constant 2 : i32
    %145 = arith.muli %c2_i32_65, %c1_i32_36 : i32
    %c1_i32_66 = arith.constant 1 : i32
    %146 = arith.addi %145, %c1_i32_66 : i32
    %147 = arith.index_cast %146 : i32 to index
    %c0_67 = arith.constant 0 : index
    %c0_68 = arith.constant 0 : index
    %148 = vector.load %arg6[%147, %c0_67, %c0_68] : memref<4x1x128xf32, #tpu.memory_space<vmem>>, vector<1x1x128xf32>
    %149 = vector.shape_cast %148 : vector<1x1x128xf32> to vector<1x128xf32>
    %150 = vector.broadcast %149 : vector<1x128xf32> to vector<16x128xf32>
    %151 = arith.addf %144, %150 : vector<16x128xf32>
    %152 = arith.negf %151 : vector<16x128xf32>
    %153 = math.exp %152 : vector<16x128xf32>
    %cst_69 = arith.constant 1.000000e+00 : f32
    %154 = vector.broadcast %cst_69 : f32 to vector<16x128xf32>
    %155 = arith.addf %154, %153 : vector<16x128xf32>
    %156 = arith.divf %154, %155 : vector<16x128xf32>
    %157 = arith.mulf %121, %156 : vector<16x128xf32>
    %158 = arith.addf %157, %90 : vector<16x128xf32>
    %cst_70 = arith.constant 0.707106769 : f32
    %159 = vector.broadcast %cst_70 : f32 to vector<16x128xf32>
    %160 = arith.mulf %158, %159 : vector<16x128xf32>
    %161 = vector.broadcast %5 : vector<16x1xf32> to vector<16x128xf32>
    %162 = arith.mulf %160, %161 : vector<16x128xf32>
    %c2_i32_71 = arith.constant 2 : i32
    %163 = arith.truncf %162 : vector<16x128xf32> to vector<16x128xbf16>
    %c0_72 = arith.constant 0 : index
    %c0_73 = arith.constant 0 : index
    %164 = vector.load %arg7[%c0_72, %c0_73] : memref<128x128xbf16, #tpu.memory_space<vmem>>, vector<128x128xbf16>
    %cst_74 = arith.constant dense<0.000000e+00> : vector<16x128xf32>
    %165 = tpu.matmul %163, %164, %cst_74 {dimension_numbers = #tpu.dot_dimension_numbers<[1], [0], [0], [1], [0, 0, 1, 1], [], []>} : vector<16x128xbf16>, vector<128x128xbf16>, vector<16x128xf32> -> vector<16x128xf32>
    %c0_75 = arith.constant 0 : index
    %c0_76 = arith.constant 0 : index
    %166 = vector.load %arg8[%c0_75, %c0_76] : memref<1x128xf32, #tpu.memory_space<vmem>>, vector<1x128xf32>
    %167 = vector.broadcast %166 : vector<1x128xf32> to vector<16x128xf32>
    %168 = arith.addf %165, %167 : vector<16x128xf32>
    %169 = vector.shape_cast %168 : vector<16x128xf32> to vector<1x16x128xf32>
    %c0_77 = arith.constant 0 : index
    %c0_78 = arith.constant 0 : index
    %c0_79 = arith.constant 0 : index
    %170 = vector.load %arg9[%c0_77, %c0_78, %c0_79] : memref<1x16x128xf32, #tpu.memory_space<vmem>>, vector<1x16x128xf32>
    tpu.vector_store %arg9[%c0_77, %c0_78, %c0_79], %169 {strides = array<i32>} : memref<1x16x128xf32, #tpu.memory_space<vmem>>, vector<1x16x128xf32>,
    %171 = arith.addf %168, %10 : vector<16x128xf32>
    %cst_80 = arith.constant 0.707106769 : f32
    %172 = vector.broadcast %cst_80 : f32 to vector<16x128xf32>
    %173 = arith.mulf %171, %172 : vector<16x128xf32>
    %174 = vector.shape_cast %173 : vector<16x128xf32> to vector<1x16x128xf32>
    %c0_81 = arith.constant 0 : index
    %c0_82 = arith.constant 0 : index
    %c0_83 = arith.constant 0 : index
    %175 = vector.load %arg10[%c0_81, %c0_82, %c0_83] : memref<1x16x128xf32, #tpu.memory_space<vmem>>, vector<1x16x128xf32>
    tpu.vector_store %arg10[%c0_81, %c0_82, %c0_83], %174 {strides = array<i32>} : memref<1x16x128xf32, #tpu.memory_space<vmem>>, vector<1x16x128xf32>,
    return
  }
  func.func @transform_0(%arg0: i32) -> (i32, i32, i32) {
    %c0_i32 = arith.constant 0 : i32
    %c0_i32_0 = arith.constant 0 : i32
    %c0_i32_1 = arith.constant 0 : i32
    return %arg0, %c0_i32, %c0_i32_0 : i32, i32, i32
  }
  func.func @transform_1(%arg0: i32) -> (i32, i32) {
    %c0_i32 = arith.constant 0 : i32
    %c0_i32_0 = arith.constant 0 : i32
    %c0_i32_1 = arith.constant 0 : i32
    return %c0_i32, %c0_i32_0 : i32, i32
  }
  func.func @transform_2(%arg0: i32) -> (i32, i32) {
    %c0_i32 = arith.constant 0 : i32
    %c0_i32_0 = arith.constant 0 : i32
    %c0_i32_1 = arith.constant 0 : i32
    return %c0_i32, %c0_i32_0 : i32, i32
  }
  func.func @transform_3(%arg0: i32) -> (i32, i32) {
    %c0_i32 = arith.constant 0 : i32
    %c0_i32_0 = arith.constant 0 : i32
    %c0_i32_1 = arith.constant 0 : i32
    return %c0_i32, %c0_i32_0 : i32, i32
  }
  func.func @transform_4(%arg0: i32) -> (i32, i32, i32) {
    %c0_i32 = arith.constant 0 : i32
    %c0_i32_0 = arith.constant 0 : i32
    %c0_i32_1 = arith.constant 0 : i32
    %c0_i32_2 = arith.constant 0 : i32
    return %c0_i32, %c0_i32_0, %c0_i32_1 : i32, i32, i32
  }
  func.func @transform_5(%arg0: i32) -> (i32, i32, i32) {
    %c0_i32 = arith.constant 0 : i32
    %c0_i32_0 = arith.constant 0 : i32
    %c0_i32_1 = arith.constant 0 : i32
    %c0_i32_2 = arith.constant 0 : i32
    return %c0_i32, %c0_i32_0, %c0_i32_1 : i32, i32, i32
  }
  func.func @transform_6(%arg0: i32) -> (i32, i32) {
    %c0_i32 = arith.constant 0 : i32
    %c0_i32_0 = arith.constant 0 : i32
    %c0_i32_1 = arith.constant 0 : i32
    return %c0_i32, %c0_i32_0 : i32, i32
  }
  func.func @transform_7(%arg0: i32) -> (i32, i32) {
    %c0_i32 = arith.constant 0 : i32
    %c0_i32_0 = arith.constant 0 : i32
    %c0_i32_1 = arith.constant 0 : i32
    return %c0_i32, %c0_i32_0 : i32, i32
  }
  func.func @transform_8(%arg0: i32) -> (i32, i32, i32) {
    %c0_i32 = arith.constant 0 : i32
    %c0_i32_0 = arith.constant 0 : i32
    %c0_i32_1 = arith.constant 0 : i32
    return %arg0, %c0_i32, %c0_i32_0 : i32, i32, i32
  }
  func.func @transform_9(%arg0: i32) -> (i32, i32, i32) {
    %c0_i32 = arith.constant 0 : i32
    %c0_i32_0 = arith.constant 0 : i32
    %c0_i32_1 = arith.constant 0 : i32
    return %arg0, %c0_i32, %c0_i32_0 : i32, i32, i32
  }
}

module attributes {stable_mosaic.version = 11 : i64} {
  func.func @cnn_encoder_kernel(%arg0: i32, %arg1: memref<1x16x128xf32, #tpu.memory_space<vmem>>, %arg2: memref<16x128xf32, #tpu.memory_space<vmem>>, %arg3: memref<128x128xbf16, #tpu.memory_space<vmem>>, %arg4: memref<1x128xf32, #tpu.memory_space<vmem>>, %arg5: memref<12x128x128xbf16, #tpu.memory_space<vmem>>, %arg6: memref<4x1x128xf32, #tpu.memory_space<vmem>>, %arg7: memref<128x128xbf16, #tpu.memory_space<vmem>>, %arg8: memref<1x128xf32, #tpu.memory_space<vmem>>, %arg9: memref<1x16x128xf32, #tpu.memory_space<vmem>>, %arg10: memref<1x16x128xf32, #tpu.memory_space<vmem>>) attributes {dimension_semantics = [#tpu.dimension_semantics<parallel>], iteration_bounds = array<i64: 2>, scalar_prefetch = 0 : i64, scratch_operands = 0 : i64, tpu.core_type = #tpu.core_type<tc>, window_params = [{transform_indices = @transform_0, window_bounds = array<i64: 1, 16, 128>}, {pipeline_mode = #tpu.pipeline_mode<synchronous>, transform_indices = @transform_1, window_bounds = array<i64: 16, 128>}, {pipeline_mode = #tpu.pipeline_mode<synchronous>, transform_indices = @transform_2, window_bounds = array<i64: 128, 128>}, {pipeline_mode = #tpu.pipeline_mode<synchronous>, transform_indices = @transform_3, window_bounds = array<i64: 1, 128>}, {pipeline_mode = #tpu.pipeline_mode<synchronous>, transform_indices = @transform_4, window_bounds = array<i64: 12, 128, 128>}, {pipeline_mode = #tpu.pipeline_mode<synchronous>, transform_indices = @transform_5, window_bounds = array<i64: 4, 1, 128>}, {pipeline_mode = #tpu.pipeline_mode<synchronous>, transform_indices = @transform_6, window_bounds = array<i64: 128, 128>}, {pipeline_mode = #tpu.pipeline_mode<synchronous>, transform_indices = @transform_7, window_bounds = array<i64: 1, 128>}, {transform_indices = @transform_8, window_bounds = array<i64: 1, 16, 128>}, {transform_indices = @transform_9, window_bounds = array<i64: 1, 16, 128>}]} {
    %0 = tpu.iota {dimensions = array<i32: 1>} : vector<1x16x1xi32>
    %c8_i32 = arith.constant 8 : i32
    %1 = vector.broadcast %c8_i32 : i32 to vector<1x16x1xi32>
    %2 = arith.cmpi slt, %0, %1 : vector<1x16x1xi32>
    %3 = arith.extui %2 : vector<1x16x1xi1> to vector<1x16x1xi32>
    %4 = arith.sitofp %3 : vector<1x16x1xi32> to vector<1x16x1xf32>
    %5 = vector.shape_cast %4 : vector<1x16x1xf32> to vector<16x1xf32>
    %c0 = arith.constant 0 : index
    %c0_0 = arith.constant 0 : index
    %c0_1 = arith.constant 0 : index
    %6 = vector.load %arg1[%c0, %c0_0, %c0_1] : memref<1x16x128xf32, #tpu.memory_space<vmem>>, vector<1x16x128xf32>
    %c0_2 = arith.constant 0 : index
    %c0_3 = arith.constant 0 : index
    %7 = vector.load %arg2[%c0_2, %c0_3] : memref<16x128xf32, #tpu.memory_space<vmem>>, vector<16x128xf32>
    %8 = vector.shape_cast %7 : vector<16x128xf32> to vector<1x16x128xf32>
    %9 = arith.addf %6, %8 : vector<1x16x128xf32>
    %10 = vector.shape_cast %9 : vector<1x16x128xf32> to vector<16x128xf32>
    %11 = arith.truncf %10 : vector<16x128xf32> to vector<16x128xbf16>
    %c0_4 = arith.constant 0 : index
    %c0_5 = arith.constant 0 : index
    %12 = vector.load %arg3[%c0_4, %c0_5] : memref<128x128xbf16, #tpu.memory_space<vmem>>, vector<128x128xbf16>
    %cst = arith.constant dense<0.000000e+00> : vector<16x128xf32>
    %13 = tpu.matmul %11, %12, %cst {dimension_numbers = #tpu.dot_dimension_numbers<[1], [0], [0], [1], [0, 0, 1, 1], [], []>} : vector<16x128xbf16>, vector<128x128xbf16>, vector<16x128xf32> -> vector<16x128xf32>
    %c0_6 = arith.constant 0 : index
    %c0_7 = arith.constant 0 : index
    %14 = vector.load %arg4[%c0_6, %c0_7] : memref<1x128xf32, #tpu.memory_space<vmem>>, vector<1x128xf32>
    %15 = vector.broadcast %14 : vector<1x128xf32> to vector<16x128xf32>
    %16 = arith.addf %13, %15 : vector<16x128xf32>
    %17 = vector.broadcast %5 : vector<16x1xf32> to vector<16x128xf32>
    %18 = arith.mulf %16, %17 : vector<16x128xf32>
    %c0_i32 = arith.constant 0 : i32
    %19 = arith.truncf %18 : vector<16x128xf32> to vector<16x128xbf16>
    %c6_i32 = arith.constant 6 : i32
    %20 = arith.muli %c0_i32, %c6_i32 : i32
    %c0_i32_8 = arith.constant 0 : i32
    %21 = arith.addi %20, %c0_i32_8 : i32
    %22 = arith.index_cast %21 : i32 to index
    %c0_9 = arith.constant 0 : index
    %c0_10 = arith.constant 0 : index
    %23 = vector.load %arg5[%22, %c0_9, %c0_10] : memref<12x128x128xbf16, #tpu.memory_space<vmem>>, vector<1x128x128xbf16>
    %24 = vector.shape_cast %23 : vector<1x128x128xbf16> to vector<128x128xbf16>
    %cst_11 = arith.constant dense<0.000000e+00> : vector<16x128xf32>
    %25 = tpu.matmul %19, %24, %cst_11 {dimension_numbers = #tpu.dot_dimension_numbers<[1], [0], [0], [1], [0, 0, 1, 1], [], []>} : vector<16x128xbf16>, vector<128x128xbf16>, vector<16x128xf32> -> vector<16x128xf32>
    %26 = vector.extract_strided_slice %25 {offsets = [15, 0], sizes = [1, 128], strides = [1, 1]} : vector<16x128xf32> to vector<1x128xf32>
    %27 = vector.extract_strided_slice %25 {offsets = [0, 0], sizes = [15, 128], strides = [1, 1]} : vector<16x128xf32> to vector<15x128xf32>
    %28 = tpu.concatenate %26, %27 in 0 : vector<1x128xf32>, vector<15x128xf32> -> vector<16x128xf32>
    %c1_i32 = arith.constant 1 : i32
    %29 = arith.addi %20, %c1_i32 : i32
    %30 = arith.index_cast %29 : i32 to index
    %c0_12 = arith.constant 0 : index
    %c0_13 = arith.constant 0 : index
    %31 = vector.load %arg5[%30, %c0_12, %c0_13] : memref<12x128x128xbf16, #tpu.memory_space<vmem>>, vector<1x128x128xbf16>
    %32 = vector.shape_cast %31 : vector<1x128x128xbf16> to vector<128x128xbf16>
    %cst_14 = arith.constant dense<0.000000e+00> : vector<16x128xf32>
    %33 = tpu.matmul %19, %32, %cst_14 {dimension_numbers = #tpu.dot_dimension_numbers<[1], [0], [0], [1], [0, 0, 1, 1], [], []>} : vector<16x128xbf16>, vector<128x128xbf16>, vector<16x128xf32> -> vector<16x128xf32>
    %34 = arith.addf %28, %33 : vector<16x128xf32>
    %c2_i32 = arith.constant 2 : i32
    %35 = arith.addi %20, %c2_i32 : i32
    %36 = arith.index_cast %35 : i32 to index
    %c0_15 = arith.constant 0 : index
    %c0_16 = arith.constant 0 : index
    %37 = vector.load %arg5[%36, %c0_15, %c0_16] : memref<12x128x128xbf16, #tpu.memory_space<vmem>>, vector<1x128x128xbf16>
    %38 = vector.shape_cast %37 : vector<1x128x128xbf16> to vector<128x128xbf16>
    %cst_17 = arith.constant dense<0.000000e+00> : vector<16x128xf32>
    %39 = tpu.matmul %19, %38, %cst_17 {dimension_numbers = #tpu.dot_dimension_numbers<[1], [0], [0], [1], [0, 0, 1, 1], [], []>} : vector<16x128xbf16>, vector<128x128xbf16>, vector<16x128xf32> -> vector<16x128xf32>
    %40 = vector.extract_strided_slice %39 {offsets = [1, 0], sizes = [15, 128], strides = [1, 1]} : vector<16x128xf32> to vector<15x128xf32>
    %41 = vector.extract_strided_slice %39 {offsets = [0, 0], sizes = [1, 128], strides = [1, 1]} : vector<16x128xf32> to vector<1x128xf32>
    %42 = tpu.concatenate %40, %41 in 0 : vector<15x128xf32>, vector<1x128xf32> -> vector<16x128xf32>
    %43 = arith.addf %34, %42 : vector<16x128xf32>
    %c2_i32_18 = arith.constant 2 : i32
    %44 = arith.muli %c2_i32_18, %c0_i32 : i32
    %45 = arith.index_cast %44 : i32 to index
    %c0_19 = arith.constant 0 : index
    %c0_20 = arith.constant 0 : index
    %46 = vector.load %arg6[%45, %c0_19, %c0_20] : memref<4x1x128xf32, #tpu.memory_space<vmem>>, vector<1x1x128xf32>
    %47 = vector.shape_cast %46 : vector<1x1x128xf32> to vector<1x128xf32>
    %48 = vector.broadcast %47 : vector<1x128xf32> to vector<16x128xf32>
    %49 = arith.addf %43, %48 : vector<16x128xf32>
    %c3_i32 = arith.constant 3 : i32
    %50 = arith.addi %20, %c3_i32 : i32
    %51 = arith.index_cast %50 : i32 to index
    %c0_21 = arith.constant 0 : index
    %c0_22 = arith.constant 0 : index
    %52 = vector.load %arg5[%51, %c0_21, %c0_22] : memref<12x128x128xbf16, #tpu.memory_space<vmem>>, vector<1x128x128xbf16>
    %53 = vector.shape_cast %52 : vector<1x128x128xbf16> to vector<128x128xbf16>
    %cst_23 = arith.constant dense<0.000000e+00> : vector<16x128xf32>
    %54 = tpu.matmul %19, %53, %cst_23 {dimension_numbers = #tpu.dot_dimension_numbers<[1], [0], [0], [1], [0, 0, 1, 1], [], []>} : vector<16x128xbf16>, vector<128x128xbf16>, vector<16x128xf32> -> vector<16x128xf32>
    %55 = vector.extract_strided_slice %54 {offsets = [15, 0], sizes = [1, 128], strides = [1, 1]} : vector<16x128xf32> to vector<1x128xf32>
    %56 = vector.extract_strided_slice %54 {offsets = [0, 0], sizes = [15, 128], strides = [1, 1]} : vector<16x128xf32> to vector<15x128xf32>
    %57 = tpu.concatenate %55, %56 in 0 : vector<1x128xf32>, vector<15x128xf32> -> vector<16x128xf32>
    %c4_i32 = arith.constant 4 : i32
    %58 = arith.addi %20, %c4_i32 : i32
    %59 = arith.index_cast %58 : i32 to index
    %c0_24 = arith.constant 0 : index
    %c0_25 = arith.constant 0 : index
    %60 = vector.load %arg5[%59, %c0_24, %c0_25] : memref<12x128x128xbf16, #tpu.memory_space<vmem>>, vector<1x128x128xbf16>
    %61 = vector.shape_cast %60 : vector<1x128x128xbf16> to vector<128x128xbf16>
    %cst_26 = arith.constant dense<0.000000e+00> : vector<16x128xf32>
    %62 = tpu.matmul %19, %61, %cst_26 {dimension_numbers = #tpu.dot_dimension_numbers<[1], [0], [0], [1], [0, 0, 1, 1], [], []>} : vector<16x128xbf16>, vector<128x128xbf16>, vector<16x128xf32> -> vector<16x128xf32>
    %63 = arith.addf %57, %62 : vector<16x128xf32>
    %c5_i32 = arith.constant 5 : i32
    %64 = arith.addi %20, %c5_i32 : i32
    %65 = arith.index_cast %64 : i32 to index
    %c0_27 = arith.constant 0 : index
    %c0_28 = arith.constant 0 : index
    %66 = vector.load %arg5[%65, %c0_27, %c0_28] : memref<12x128x128xbf16, #tpu.memory_space<vmem>>, vector<1x128x128xbf16>
    %67 = vector.shape_cast %66 : vector<1x128x128xbf16> to vector<128x128xbf16>
    %cst_29 = arith.constant dense<0.000000e+00> : vector<16x128xf32>
    %68 = tpu.matmul %19, %67, %cst_29 {dimension_numbers = #tpu.dot_dimension_numbers<[1], [0], [0], [1], [0, 0, 1, 1], [], []>} : vector<16x128xbf16>, vector<128x128xbf16>, vector<16x128xf32> -> vector<16x128xf32>
    %69 = vector.extract_strided_slice %68 {offsets = [1, 0], sizes = [15, 128], strides = [1, 1]} : vector<16x128xf32> to vector<15x128xf32>
    %70 = vector.extract_strided_slice %68 {offsets = [0, 0], sizes = [1, 128], strides = [1, 1]} : vector<16x128xf32> to vector<1x128xf32>
    %71 = tpu.concatenate %69, %70 in 0 : vector<15x128xf32>, vector<1x128xf32> -> vector<16x128xf32>
    %72 = arith.addf %63, %71 : vector<16x128xf32>
    %c2_i32_30 = arith.constant 2 : i32
    %73 = arith.muli %c2_i32_30, %c0_i32 : i32
    %c1_i32_31 = arith.constant 1 : i32
    %74 = arith.addi %73, %c1_i32_31 : i32
    %75 = arith.index_cast %74 : i32 to index
    %c0_32 = arith.constant 0 : index
    %c0_33 = arith.constant 0 : index
    %76 = vector.load %arg6[%75, %c0_32, %c0_33] : memref<4x1x128xf32, #tpu.memory_space<vmem>>, vector<1x1x128xf32>
    %77 = vector.shape_cast %76 : vector<1x1x128xf32> to vector<1x128xf32>
    %78 = vector.broadcast %77 : vector<1x128xf32> to vector<16x128xf32>
    %79 = arith.addf %72, %78 : vector<16x128xf32>
    %80 = arith.negf %79 : vector<16x128xf32>
    %81 = math.exp %80 : vector<16x128xf32>
    %cst_34 = arith.constant 1.000000e+00 : f32
    %82 = vector.broadcast %cst_34 : f32 to vector<16x128xf32>
    %83 = arith.addf %82, %81 : vector<16x128xf32>
    %84 = arith.divf %82, %83 : vector<16x128xf32>
    %85 = arith.mulf %49, %84 : vector<16x128xf32>
    %86 = arith.addf %85, %18 : vector<16x128xf32>
    %cst_35 = arith.constant 0.707106769 : f32
    %87 = vector.broadcast %cst_35 : f32 to vector<16x128xf32>
    %88 = arith.mulf %86, %87 : vector<16x128xf32>
    %89 = vector.broadcast %5 : vector<16x1xf32> to vector<16x128xf32>
    %90 = arith.mulf %88, %89 : vector<16x128xf32>
    %c1_i32_36 = arith.constant 1 : i32
    %91 = arith.truncf %90 : vector<16x128xf32> to vector<16x128xbf16>
    %c6_i32_37 = arith.constant 6 : i32
    %92 = arith.muli %c1_i32_36, %c6_i32_37 : i32
    %c0_i32_38 = arith.constant 0 : i32
    %93 = arith.addi %92, %c0_i32_38 : i32
    %94 = arith.index_cast %93 : i32 to index
    %c0_39 = arith.constant 0 : index
    %c0_40 = arith.constant 0 : index
    %95 = vector.load %arg5[%94, %c0_39, %c0_40] : memref<12x128x128xbf16, #tpu.memory_space<vmem>>, vector<1x128x128xbf16>
    %96 = vector.shape_cast %95 : vector<1x128x128xbf16> to vector<128x128xbf16>
    %cst_41 = arith.constant dense<0.000000e+00> : vector<16x128xf32>
    %97 = tpu.matmul %91, %96, %cst_41 {dimension_numbers = #tpu.dot_dimension_numbers<[1], [0], [0], [1], [0, 0, 1, 1], [], []>} : vector<16x128xbf16>, vector<128x128xbf16>, vector<16x128xf32> -> vector<16x128xf32>
    %98 = vector.extract_strided_slice %97 {offsets = [15, 0], sizes = [1, 128], strides = [1, 1]} : vector<16x128xf32> to vector<1x128xf32>
    %99 = vector.extract_strided_slice %97 {offsets = [0, 0], sizes = [15, 128], strides = [1, 1]} : vector<16x128xf32> to vector<15x128xf32>
    %100 = tpu.concatenate %98, %99 in 0 : vector<1x128xf32>, vector<15x128xf32> -> vector<16x128xf32>
    %c1_i32_42 = arith.constant 1 : i32
    %101 = arith.addi %92, %c1_i32_42 : i32
    %102 = arith.index_cast %101 : i32 to index
    %c0_43 = arith.constant 0 : index
    %c0_44 = arith.constant 0 : index
    %103 = vector.load %arg5[%102, %c0_43, %c0_44] : memref<12x128x128xbf16, #tpu.memory_space<vmem>>, vector<1x128x128xbf16>
    %104 = vector.shape_cast %103 : vector<1x128x128xbf16> to vector<128x128xbf16>
    %cst_45 = arith.constant dense<0.000000e+00> : vector<16x128xf32>
    %105 = tpu.matmul %91, %104, %cst_45 {dimension_numbers = #tpu.dot_dimension_numbers<[1], [0], [0], [1], [0, 0, 1, 1], [], []>} : vector<16x128xbf16>, vector<128x128xbf16>, vector<16x128xf32> -> vector<16x128xf32>
    %106 = arith.addf %100, %105 : vector<16x128xf32>
    %c2_i32_46 = arith.constant 2 : i32
    %107 = arith.addi %92, %c2_i32_46 : i32
    %108 = arith.index_cast %107 : i32 to index
    %c0_47 = arith.constant 0 : index
    %c0_48 = arith.constant 0 : index
    %109 = vector.load %arg5[%108, %c0_47, %c0_48] : memref<12x128x128xbf16, #tpu.memory_space<vmem>>, vector<1x128x128xbf16>
    %110 = vector.shape_cast %109 : vector<1x128x128xbf16> to vector<128x128xbf16>
    %cst_49 = arith.constant dense<0.000000e+00> : vector<16x128xf32>
    %111 = tpu.matmul %91, %110, %cst_49 {dimension_numbers = #tpu.dot_dimension_numbers<[1], [0], [0], [1], [0, 0, 1, 1], [], []>} : vector<16x128xbf16>, vector<128x128xbf16>, vector<16x128xf32> -> vector<16x128xf32>
    %112 = vector.extract_strided_slice %111 {offsets = [1, 0], sizes = [15, 128], strides = [1, 1]} : vector<16x128xf32> to vector<15x128xf32>
    %113 = vector.extract_strided_slice %111 {offsets = [0, 0], sizes = [1, 128], strides = [1, 1]} : vector<16x128xf32> to vector<1x128xf32>
    %114 = tpu.concatenate %112, %113 in 0 : vector<15x128xf32>, vector<1x128xf32> -> vector<16x128xf32>
    %115 = arith.addf %106, %114 : vector<16x128xf32>
    %c2_i32_50 = arith.constant 2 : i32
    %116 = arith.muli %c2_i32_50, %c1_i32_36 : i32
    %117 = arith.index_cast %116 : i32 to index
    %c0_51 = arith.constant 0 : index
    %c0_52 = arith.constant 0 : index
    %118 = vector.load %arg6[%117, %c0_51, %c0_52] : memref<4x1x128xf32, #tpu.memory_space<vmem>>, vector<1x1x128xf32>
    %119 = vector.shape_cast %118 : vector<1x1x128xf32> to vector<1x128xf32>
    %120 = vector.broadcast %119 : vector<1x128xf32> to vector<16x128xf32>
    %121 = arith.addf %115, %120 : vector<16x128xf32>
    %c3_i32_53 = arith.constant 3 : i32
    %122 = arith.addi %92, %c3_i32_53 : i32
    %123 = arith.index_cast %122 : i32 to index
    %c0_54 = arith.constant 0 : index
    %c0_55 = arith.constant 0 : index
    %124 = vector.load %arg5[%123, %c0_54, %c0_55] : memref<12x128x128xbf16, #tpu.memory_space<vmem>>, vector<1x128x128xbf16>
    %125 = vector.shape_cast %124 : vector<1x128x128xbf16> to vector<128x128xbf16>
    %cst_56 = arith.constant dense<0.000000e+00> : vector<16x128xf32>
    %126 = tpu.matmul %91, %125, %cst_56 {dimension_numbers = #tpu.dot_dimension_numbers<[1], [0], [0], [1], [0, 0, 1, 1], [], []>} : vector<16x128xbf16>, vector<128x128xbf16>, vector<16x128xf32> -> vector<16x128xf32>
    %127 = vector.extract_strided_slice %126 {offsets = [15, 0], sizes = [1, 128], strides = [1, 1]} : vector<16x128xf32> to vector<1x128xf32>
    %128 = vector.extract_strided_slice %126 {offsets = [0, 0], sizes = [15, 128], strides = [1, 1]} : vector<16x128xf32> to vector<15x128xf32>
    %129 = tpu.concatenate %127, %128 in 0 : vector<1x128xf32>, vector<15x128xf32> -> vector<16x128xf32>
    %c4_i32_57 = arith.constant 4 : i32
    %130 = arith.addi %92, %c4_i32_57 : i32
    %131 = arith.index_cast %130 : i32 to index
    %c0_58 = arith.constant 0 : index
    %c0_59 = arith.constant 0 : index
    %132 = vector.load %arg5[%131, %c0_58, %c0_59] : memref<12x128x128xbf16, #tpu.memory_space<vmem>>, vector<1x128x128xbf16>
    %133 = vector.shape_cast %132 : vector<1x128x128xbf16> to vector<128x128xbf16>
    %cst_60 = arith.constant dense<0.000000e+00> : vector<16x128xf32>
    %134 = tpu.matmul %91, %133, %cst_60 {dimension_numbers = #tpu.dot_dimension_numbers<[1], [0], [0], [1], [0, 0, 1, 1], [], []>} : vector<16x128xbf16>, vector<128x128xbf16>, vector<16x128xf32> -> vector<16x128xf32>
    %135 = arith.addf %129, %134 : vector<16x128xf32>
    %c5_i32_61 = arith.constant 5 : i32
    %136 = arith.addi %92, %c5_i32_61 : i32
    %137 = arith.index_cast %136 : i32 to index
    %c0_62 = arith.constant 0 : index
    %c0_63 = arith.constant 0 : index
    %138 = vector.load %arg5[%137, %c0_62, %c0_63] : memref<12x128x128xbf16, #tpu.memory_space<vmem>>, vector<1x128x128xbf16>
    %139 = vector.shape_cast %138 : vector<1x128x128xbf16> to vector<128x128xbf16>
    %cst_64 = arith.constant dense<0.000000e+00> : vector<16x128xf32>
    %140 = tpu.matmul %91, %139, %cst_64 {dimension_numbers = #tpu.dot_dimension_numbers<[1], [0], [0], [1], [0, 0, 1, 1], [], []>} : vector<16x128xbf16>, vector<128x128xbf16>, vector<16x128xf32> -> vector<16x128xf32>
    %141 = vector.extract_strided_slice %140 {offsets = [1, 0], sizes = [15, 128], strides = [1, 1]} : vector<16x128xf32> to vector<15x128xf32>
    %142 = vector.extract_strided_slice %140 {offsets = [0, 0], sizes = [1, 128], strides = [1, 1]} : vector<16x128xf32> to vector<1x128xf32>
    %143 = tpu.concatenate %141, %142 in 0 : vector<15x128xf32>, vector<1x128xf32> -> vector<16x128xf32>
    %144 = arith.addf %135, %143 : vector<16x128xf32>
    %c2_i32_65 = arith.constant 2 : i32
    %145 = arith.muli %c2_i32_65, %c1_i32_36 : i32
    %c1_i32_66 = arith.constant 1 : i32
    %146 = arith.addi %145, %c1_i32_66 : i32
    %147 = arith.index_cast %146 : i32 to index
    %c0_67 = arith.constant 0 : index
    %c0_68 = arith.constant 0 : index
    %148 = vector.load %arg6[%147, %c0_67, %c0_68] : memref<4x1x128xf32, #tpu.memory_space<vmem>>, vector<1x1x128xf32>
    %149 = vector.shape_cast %148 : vector<1x1x128xf32> to vector<1x128xf32>
    %150 = vector.broadcast %149 : vector<1x128xf32> to vector<16x128xf32>
    %151 = arith.addf %144, %150 : vector<16x128xf32>
    %152 = arith.negf %151 : vector<16x128xf32>
    %153 = math.exp %152 : vector<16x128xf32>
    %cst_69 = arith.constant 1.000000e+00 : f32
    %154 = vector.broadcast %cst_69 : f32 to vector<16x128xf32>
    %155 = arith.addf %154, %153 : vector<16x128xf32>
    %156 = arith.divf %154, %155 : vector<16x128xf32>
    %157 = arith.mulf %121, %156 : vector<16x128xf32>
    %158 = arith.addf %157, %90 : vector<16x128xf32>
    %cst_70 = arith.constant 0.707106769 : f32
    %159 = vector.broadcast %cst_70 : f32 to vector<16x128xf32>
    %160 = arith.mulf %158, %159 : vector<16x128xf32>
    %161 = vector.broadcast %5 : vector<16x1xf32> to vector<16x128xf32>
    %162 = arith.mulf %160, %161 : vector<16x128xf32>
    %c2_i32_71 = arith.constant 2 : i32
    %163 = arith.truncf %162 : vector<16x128xf32> to vector<16x128xbf16>
    %c0_72 = arith.constant 0 : index
    %c0_73 = arith.constant 0 : index
    %164 = vector.load %arg7[%c0_72, %c0_73] : memref<128x128xbf16, #tpu.memory_space<vmem>>, vector<128x128xbf16>
    %cst_74 = arith.constant dense<0.000000e+00> : vector<16x128xf32>
    %165 = tpu.matmul %163, %164, %cst_74 {dimension_numbers = #tpu.dot_dimension_numbers<[1], [0], [0], [1], [0, 0, 1, 1], [], []>} : vector<16x128xbf16>, vector<128x128xbf16>, vector<16x128xf32> -> vector<16x128xf32>
    %c0_75 = arith.constant 0 : index
    %c0_76 = arith.constant 0 : index
    %166 = vector.load %arg8[%c0_75, %c0_76] : memref<1x128xf32, #tpu.memory_space<vmem>>, vector<1x128xf32>
    %167 = vector.broadcast %166 : vector<1x128xf32> to vector<16x128xf32>
    %168 = arith.addf %165, %167 : vector<16x128xf32>
    %169 = vector.shape_cast %168 : vector<16x128xf32> to vector<1x16x128xf32>
    %c0_77 = arith.constant 0 : index
    %c0_78 = arith.constant 0 : index
    %c0_79 = arith.constant 0 : index
    %170 = vector.load %arg9[%c0_77, %c0_78, %c0_79] : memref<1x16x128xf32, #tpu.memory_space<vmem>>, vector<1x16x128xf32>
    tpu.vector_store %arg9[%c0_77, %c0_78, %c0_79], %169 {strides = array<i32>} : memref<1x16x128xf32, #tpu.memory_space<vmem>>, vector<1x16x128xf32>,
    %171 = arith.addf %168, %10 : vector<16x128xf32>
    %cst_80 = arith.constant 0.707106769 : f32
    %172 = vector.broadcast %cst_80 : f32 to vector<16x128xf32>
    %173 = arith.mulf %171, %172 : vector<16x128xf32>
    %174 = vector.shape_cast %173 : vector<16x128xf32> to vector<1x16x128xf32>
    %c0_81 = arith.constant 0 : index
    %c0_82 = arith.constant 0 : index
    %c0_83 = arith.constant 0 : index
    %175 = vector.load %arg10[%c0_81, %c0_82, %c0_83] : memref<1x16x128xf32, #tpu.memory_space<vmem>>, vector<1x16x128xf32>
    tpu.vector_store %arg10[%c0_81, %c0_82, %c0_83], %174 {strides = array<i32>} : memref<1x16x128xf32, #tpu.memory_space<vmem>>, vector<1x16x128xf32>,
    return
  }
  func.func @transform_0(%arg0: i32) -> (i32, i32, i32) {
    %c0_i32 = arith.constant 0 : i32
    %c0_i32_0 = arith.constant 0 : i32
    %c0_i32_1 = arith.constant 0 : i32
    return %arg0, %c0_i32, %c0_i32_0 : i32, i32, i32
  }
  func.func @transform_1(%arg0: i32) -> (i32, i32) {
    %c0_i32 = arith.constant 0 : i32
    %c0_i32_0 = arith.constant 0 : i32
    %c0_i32_1 = arith.constant 0 : i32
    return %c0_i32, %c0_i32_0 : i32, i32
  }
  func.func @transform_2(%arg0: i32) -> (i32, i32) {
    %c0_i32 = arith.constant 0 : i32
    %c0_i32_0 = arith.constant 0 : i32
    %c0_i32_1 = arith.constant 0 : i32
    return %c0_i32, %c0_i32_0 : i32, i32
  }
  func.func @transform_3(%arg0: i32) -> (i32, i32) {
    %c0_i32 = arith.constant 0 : i32
    %c0_i32_0 = arith.constant 0 : i32
    %c0_i32_1 = arith.constant 0 : i32
    return %c0_i32, %c0_i32_0 : i32, i32
  }
  func.func @transform_4(%arg0: i32) -> (i32, i32, i32) {
    %c0_i32 = arith.constant 0 : i32
    %c0_i32_0 = arith.constant 0 : i32
    %c0_i32_1 = arith.constant 0 : i32
    %c0_i32_2 = arith.constant 0 : i32
    return %c0_i32, %c0_i32_0, %c0_i32_1 : i32, i32, i32
  }
  func.func @transform_5(%arg0: i32) -> (i32, i32, i32) {
    %c0_i32 = arith.constant 0 : i32
    %c0_i32_0 = arith.constant 0 : i32
    %c0_i32_1 = arith.constant 0 : i32
    %c0_i32_2 = arith.constant 0 : i32
    return %c0_i32, %c0_i32_0, %c0_i32_1 : i32, i32, i32
  }
  func.func @transform_6(%arg0: i32) -> (i32, i32) {
    %c0_i32 = arith.constant 0 : i32
    %c0_i32_0 = arith.constant 0 : i32
    %c0_i32_1 = arith.constant 0 : i32
    return %c0_i32, %c0_i32_0 : i32, i32
  }
  func.func @transform_7(%arg0: i32) -> (i32, i32) {
    %c0_i32 = arith.constant 0 : i32
    %c0_i32_0 = arith.constant 0 : i32
    %c0_i32_1 = arith.constant 0 : i32
    return %c0_i32, %c0_i32_0 : i32, i32
  }
  func.func @transform_8(%arg0: i32) -> (i32, i32, i32) {
    %c0_i32 = arith.constant 0 : i32
    %c0_i32_0 = arith.constant 0 : i32
    %c0_i32_1 = arith.constant 0 : i32
    return %arg0, %c0_i32, %c0_i32_0 : i32, i32, i32
  }
  func.func @transform_9(%arg0: i32) -> (i32, i32, i32) {
    %c0_i32 = arith.constant 0 : i32
    %c0_i32_0 = arith.constant 0 : i32
    %c0_i32_1 = arith.constant 0 : i32
    return %arg0, %c0_i32, %c0_i32_0 : i32, i32, i32
  }
}

</mosaic_0001>

<bundles_post_ra>
// kernel: tpu_custom_call.1
= control target key start
LH: loop header
LB: loop body
LE: loop exit
PB: predicated region body
PF: predicated region fallthrough
CT: control target
= control target key end

     0   :  { %s3341_s0 = inlined_call_operand.hbm [shape: f32[2,16,128], index: 0, kind: input, shape index: {}]   ;;  %s3342_s1 = inlined_call_operand.hbm [shape: f32[16,128], index: 1, kind: input, shape index: {}]   ;;  %s3343_s2 = inlined_call_operand.hbm [shape: bf16[128,128], index: 2, kind: input, shape index: {}]   ;;  %s3344_s3 = inlined_call_operand.hbm [shape: f32[1,128], index: 3, kind: input, shape index: {}]   ;;  %s3345_s4 = inlined_call_operand.hbm [shape: bf16[12,128,128], index: 4, kind: input, shape index: {}]   ;;  %s3346_s5 = inlined_call_operand.vmem [shape: f32[4,1,128], index: 5, kind: input, shape index: {}]   ;;  %s3347_s6 = inlined_call_operand.hbm [shape: bf16[128,128], index: 6, kind: input, shape index: {}]   ;;  %s3348_s7 = inlined_call_operand.vmem [shape: f32[1,128], index: 7, kind: input, shape index: {}]   ;;  %s3349_s8 = inlined_call_operand.hbm [shape: f32[2,16,128], index: 8, kind: output, shape index: {0}]   ;;  %s3350_s9 = inlined_call_operand.hbm [shape: f32[2,16,128], index: 9, kind: output, shape index: {1}]  }
   0x1   :  { %3353 = sst [smem:[#allocation22_spill]] %s3341_s0 }
   0x2   :  { %3354 = sst [smem:[#allocation23_spill]] %s3342_s1 }
   0x3   :  { %3355 = sst [smem:[#allocation24_spill]] %s3343_s2 }
   0x4   :  { %3356 = sst [smem:[#allocation25_spill]] %s3344_s3 }
   0x5   :  { %15 = vsyncpa [#allocation3], 0 }
   0x6   :  { %17 = vsyncpa [#allocation3 + $0x1], 0 }
   0x7   :  { %18 = vsyncpa [#allocation6], 0 }
   0x8   :  { %19 = vsyncpa [#allocation9], 0 }
   0x9   :  { %20 = vsyncpa [#allocation12], 0 }
   0xa   :  { %21 = vsyncpa [#allocation4], 0 }
   0xb   :  { %23 = vsyncpa [#allocation4 + $0x1], 0 }
   0xc   :  { %24 = vsyncpa [#allocation15], 0 }
   0xd   :  { %26 = vsyncpa [#allocation15 + $0x1], 0  ;;  %s3067_s30 = smov 0   ;;  %s3069_s10 = smov 0  }
   0xe   :  { %s3071_s11 = smov 0   ;;  %s3073_s12 = smov 0  }
   0xf LB: > { %s3357_s1 = sld [smem:[#allocation23_spill]]  ;;  %s3091_s16 = sadd.s32 4294967295, %s3004_s12   ;;  %s3004_s12 = sphi %s3073_s12, %s3373_s12   ;;  %s3000_s11 = sphi %s3071_s11, %s3372_s11   ;;  %s2996_s10 = sphi %s3069_s10, %s3371_s10   ;;  %s2992_s30 = sphi %s3067_s30, %s3370_s30  }
  0x10   : > { %p1987_p0 = scmp.ge.s32.totalorder %s3004_s12, 1  ;;  %p53_p1 = scmp.eq.s32.totalorder %s3091_s16, 0 }
  0x11   : > { %p262_p2 = scmp.lt.s32.totalorder %s3004_s12, 3  ;;  %s3006_s18 = smov [#allocation5]  }
  0x12   : > { %s275_s19 = sshll.u32 %s3006_s18, 4  ;;  %s3359_s3 = sld [smem:[#allocation25_spill]]  ;;  %s276_s19 = int_to_ptr.vmem [resolvable:$true] %s275_s19 }
  0x13   : > { %p3096_p3 = pnand %p1987_p0, %p262_p2  ;;  %s3361_s2 = sld [smem:[#allocation24_spill]] }
  0x14   : > { %s3007_s27 = smov [#allocation8]   ;;  %s3351_s29 = smov 128  }
  0x15   : > { %s273_s15 = sshll.u32 %s3357_s1, 4  ;;  %p2610_p4 = pneg %p3096_p3  ;;  %s274_s15 = int_to_ptr.hbm [resolvable:$true] %s273_s15 }
  0x16   : > { %s304_s28 = sshll.u32 %s3007_s27, 4  ;;  %s3352_s13 = smov 8   ;;  %s305_s28 = int_to_ptr.vmem [resolvable:$true] %s304_s28 }
  0x17   : > { %p3108_p6 = pnand %p2610_p4, %p53_p1  ;;  %s3010_s14 = smov [#allocation7]  }
  0x18   : > { %s302_s22 = sshll.u32 %s3359_s3, 4  ;;  %s289_s18 = sshll.u32 %s3010_s14, 4  ;;  %s303_s22 = int_to_ptr.hbm [resolvable:$true] %s302_s22  ;;  %s290_s18 = int_to_ptr.vmem [resolvable:$true] %s289_s18 }
  0x19   : > { %s287_s26 = sshll.u32 %s3361_s2, 4  ;;  %s313_s24 = sshll.u32 %s3345_s4, 4  ;;  %s288_s26 = int_to_ptr.hbm [resolvable:$true] %s287_s26  ;;  %s314_s24 = int_to_ptr.hbm [resolvable:$true] %s313_s24 }
  0x1a   : > { %2613 = dma.hbm_to_vmem [thread:$0]  (!%p3108_p6), %s274_s15, 256, %s276_s19, [#allocation6], %s3351_s29, %s3351_s29, %s3352_s13  }
  0x1b   : > { %2619 = dma.hbm_to_vmem [thread:$0]  (!%p3108_p6), %s303_s22, 16, %s305_s28, [#allocation9]  }
  0x1c   : > { %s3011_s25 = smov 64   ;;  %s3012_s27 = smov 4  }
  0x1d   : > { %2616 = dma.hbm_to_vmem [thread:$0]  (!%p3108_p6), %s288_s26, 1024, %s290_s18, [#allocation6], %s3011_s25, %s3011_s25, %s3012_s27  }
  0x1e   : > { %s3013_s15 = smov [#allocation10]   ;;  %s330_s14 = sshll.u32 %s3347_s6, 4  ;;  %s331_s14 = int_to_ptr.hbm [resolvable:$true] %s330_s14 }
  0x1f   : > { %s315_s19 = sshll.u32 %s3013_s15, 4  ;;  %s3014_s26 = smov [#allocation11]   ;;  %s316_s19 = int_to_ptr.vmem [resolvable:$true] %s315_s19 }
  0x20   : > { %2622 = dma.hbm_to_vmem [thread:$0]  (!%p3108_p6), %s314_s24, 12288, %s316_s19, [#allocation9], %s3011_s25, %s3011_s25, %s3012_s27  }
  0x21   : > { %s332_s18 = sshll.u32 %s3014_s26, 4  ;;  %s1986_s20 = sadd.s32 4294967294, %s3004_s12   ;;  %s333_s18 = int_to_ptr.vmem [resolvable:$true] %s332_s18 }
  0x22   : > { %2625 = dma.hbm_to_vmem [thread:$0]  (!%p3108_p6), %s331_s14, 1024, %s333_s18, [#allocation12], %s3011_s25, %s3011_s25, %s3012_s27  }
  0x23   : > { %s3136_s21 = sadd.s32 1, %s3004_s12   ;;  %s39_s15 = sadd.s32 1, %s3000_s11 }
  0x24   : > { %s36_s22 = ssub.s32 %s3004_s12, %s3136_s21  ;;  %p46_p7 = scmp.ne.s32.totalorder %s3000_s11, %s2996_s10 }
  0x25   : > { %p37_p8 = scmp.eq.s32.totalorder %s36_s22, 0  ;;  %p47_p9 = scmp.eq.s32.totalorder %s3004_s12, 0 }
  0x26   : > { %p52_p10 = scmp.ne.s32.totalorder %s2996_s10, %s2992_s30  ;;  %p223_p11 = scmp.eq.s32.totalorder %s3091_s16, 1 }
  0x27   : > { %s3148_s24 = scalar_select %p37_p8, %s3000_s11, %s39_s15  }
  0x28   : > { %p3152_p12 = por %p53_p1, %p52_p10  ;;  %p3156_p13 = por %p223_p11, %p46_p7 }
  0x29   : > { %p229_p0 = scmp.eq.s32.totalorder %s1986_s20, 1  ;;  %p48_p2 = por %p47_p9, %p46_p7 }
  0x2a   : > { %s349_s27 = sand.u32 1, %s3000_s11   ;;  %p2642_p6 = scmp.lt.s32.totalorder %s3004_s12, 2 }
  0x2b   : > { %p3161_p4 = por %p229_p0, %p52_p10  ;;  %s1994_s28 = sshll.u32 %s349_s27, 4 }
  0x2c   : > { %s2469_s14 = sshll.u32 %s3004_s12, 4  ;;  %s3365_s0 = sld [smem:[#allocation22_spill]] }
  0x2d   : > { %s353_s29 = scalar_lea.vmem [#allocation2], %s1994_s28  ;;  %p3170_p8 = pnand %p2642_p6, %p48_p2 }
  0x2e   : > { %s361_s13 = sshll.u32 %s353_s29, 4  ;;  %s350_s1 = scalar_lea.sflag [#allocation3], %s349_s27  ;;  %s362_s13 = int_to_ptr.vmem [resolvable:$true] %s361_s13 }
  0x2f   : > { %p2868_p9 = pneg %p3170_p8 }
  0x32   : > { %s358_s15 = scalar_lea.hbm %s3365_s0, %s2469_s14  ;;  %s2871_s29 = scalar_lea.hbm %s3365_s0, 32 }
  0x33   : > { %s359_s22 = sshll.u32 %s358_s15, 4  ;;  %s360_s22 = int_to_ptr.hbm [resolvable:$true] %s359_s22 }
  0x34   : > { %s2864_s2 = sshra.s32 %s360_s22, 4  ;;  %s2865_s2 = int_to_ptr.hbm [resolvable:$true] %s2864_s2 }
  0x35   : > { %s2866_s3 = scalar_lea.hbm %s2865_s2, 16  ;;  %p2872_p0 = scmp.lt.s32.totalorder %s2865_s2, %s3365_s0 }
  0x36   : > { %p2867_p7 = scmp.ne.s32.totalorder %s2865_s2, %s2866_s3  ;;  %p2873_p2 = scmp.lt.s32.totalorder %s2871_s29, %s2866_s3 }
  0x38   : > { %p2869_p10 = pnand %p2868_p9, %p2867_p7  ;;  %p2874_p6 = por %p2873_p2, %p2872_p0 }
  0x3a   : > { %p2870_p11 = pneg %p2869_p10 }
  0x3c   : > { %p2875_p5 = pnand %p2874_p6, %p2870_p11 }
  0x3e   : > { %2878 = shalt.err (!%p2875_p5)
}
  0x3f   : > { %s3367_s27 = smov 8   ;;  %s3368_s15 = smov 128  }
  0x40   : > { %2629 = dma.hbm_to_vmem [thread:$0]  (!%p3170_p8), %s360_s22, 256, %s362_s13, %s350_s1, %s3368_s15, %s3368_s15, %s3367_s27  }
  0x41   : > { %373 = sbr.rel (%p3096_p3) target bundleno = 803 (0x323), region = 52  ;;  %s3190_s14 = sand.u32 (!%p3096_p3), 1, %s2996_s10  }
  0x42   : > { %s3193_s2 = sshll.u32 (!%p3096_p3), %s3190_s14, 4  ;;  %s376_s3 = scalar_lea.sflag (!%p3096_p3), [#allocation3], %s3190_s14 }
  0x43   : > { %s379_s26 = scalar_lea.vmem (!%p3096_p3), [#allocation2], %s3193_s2 }
  0x46   : > { %2967 = dma.done.wait (%p3152_p12), %s376_s3, 256  }
  0x47   : > { %2969 = vsyncadd (%p3152_p12), %s376_s3, 4294967040 }
  0x48   : > { %2971 = dma.done.wait (%p53_p1), [#allocation6], 1280  }
  0x49   : > { %2973 = vsyncadd (%p53_p1), [#allocation6], 4294966016 }
  0x4a   : > { %2975 = dma.done.wait (%p53_p1), [#allocation9], 12304  }
  0x4b   : > { %2977 = vsyncadd (%p53_p1), [#allocation9], 4294954992 }
  0x4c   : > { %2979 = dma.done.wait (%p53_p1), [#allocation12], 1024  }
  0x4d   : > { %2981 = vsyncadd (%p53_p1), [#allocation12], 4294966272  ;;  %v2477_v0 = vld [vmem:[#allocation7 + $0x38] sm:$0xff]  ;;  %v2476_v1 = vld [vmem:[#allocation7 + $0x30] sm:$0xff]  ;;  %vm628_vm0 = vcmask 1040384   ;;  %vm796_vm1 = vcmask 1046528  }
  0x4e   : > { %529 = vmatpush.bf16.msra.mxu0 %v2477_v0  ;;  %v2485_v2 = vld [vmem:[#allocation10 + $0x38] sm:$0xff]  ;;  %v2475_v4 = vld [vmem:[#allocation7 + $0x28] sm:$0xff]  ;;  %v2484_v5 = vld [vmem:[#allocation10 + $0x30] sm:$0xff]  ;;  %s2582_s15 = sshll.u32 %s3091_s16, 4  ;;  %s437_s17 = scalar_lea.vmem [#allocation13], %s3193_s2 }
  0x4f   : > { %v2493_v3 = vld [vmem:[#allocation10 + $0x78] sm:$0xff]  ;;  %610 = vmatpush.bf16.msra.mxu1 %v2485_v2  ;;  %v2492_v7 = vld [vmem:[#allocation10 + $0x70] sm:$0xff]  ;;  %v2483_v10 = vld [vmem:[#allocation10 + $0x28] sm:$0xff]  ;;  %s1811_s1 = scalar_lea.hbm %s3349_s8, %s2582_s15  ;;  %s1812_s13 = sshll.u32 %s437_s17, 4  ;;  %s1813_s13 = int_to_ptr.vmem [resolvable:$true] %s1812_s13 }
  0x50   : > { %v2501_v6 = vld [vmem:[#allocation10 + $0xb8] sm:$0xff]  ;;  %699 = vmatpush.bf16.msra.mxu2 %v2493_v3  ;;  %v2500_v8 = vld [vmem:[#allocation10 + $0xb0] sm:$0xff]  ;;  %v2491_v11 = vld [vmem:[#allocation10 + $0x68] sm:$0xff]  ;;  %s1814_s23 = sshll.u32 %s1811_s1, 4  ;;  %s3289_s22 = scalar_lea.vmem [#allocation14], %s3193_s2  ;;  %s1815_s23 = int_to_ptr.hbm [resolvable:$true] %s1814_s23 }
  0x51   : > { %780 = vmatpush.bf16.msra.mxu3 %v2501_v6  ;;  %v2474_v9 = vld [vmem:[#allocation7 + $0x20] sm:$0xff]  ;;  %v2499_v12 = vld [vmem:[#allocation10 + $0xa8] sm:$0xff]  ;;  %v2473_v13 = vld [vmem:[#allocation7 + $0x18] sm:$0xff]  ;;  %s1829_s20 = sshll.u32 %s3289_s22, 4  ;;  %s1828_s28 = scalar_lea.hbm %s3350_s9, %s2582_s15  ;;  %s3296_s20 = int_to_ptr.vmem [resolvable:$true] %s1829_s20 }
  0x52   : > { %530 = vmatpush.bf16.msra.mxu0 %v2476_v1  ;;  %v2482_v14 = vld [vmem:[#allocation10 + $0x20] sm:$0xff]  ;;  %v2472_v17 = vld [vmem:[#allocation7 + $0x10] sm:$0xff]  ;;  %v2481_v18 = vld [vmem:[#allocation10 + $0x18] sm:$0xff]  ;;  %s1831_s18 = sshll.u32 %s1828_s28, 4  ;;  %s1795_s2 = scalar_lea.sflag [#allocation4], %s3190_s14  ;;  %s1832_s18 = int_to_ptr.hbm [resolvable:$true] %s1831_s18 }
  0x53   : > { %611 = vmatpush.bf16.msra.mxu1 %v2484_v5  ;;  %v2490_v15 = vld [vmem:[#allocation10 + $0x60] sm:$0xff]  ;;  %v2489_v19 = vld [vmem:[#allocation10 + $0x58] sm:$0xff]  ;;  %v456_v23 = vld [vmem:[#allocation5] sm:$0xff]  ;;  %s2908_s27 = sshra.s32 %s1815_s23, 4  ;;  %s2914_s15 = scalar_lea.hbm %s3349_s8, 32  ;;  %s2909_s27 = int_to_ptr.hbm [resolvable:$true] %s2908_s27 }
  0x54   : > { %700 = vmatpush.bf16.msra.mxu2 %v2492_v7  ;;  %v2498_v16 = vld [vmem:[#allocation10 + $0xa0] sm:$0xff]  ;;  %v457_v24 = vld [vmem:[#allocation5 + $0x8] sm:$0xff]  ;;  %v2479_v30 = vld [vmem:[#allocation10 + $0x8] sm:$0xff]  ;;  %s2910_s3 = scalar_lea.hbm %s2909_s27, 16  ;;  %p2915_p12 = scmp.lt.s32.totalorder %s2909_s27, %s3349_s8 }
  0x55   : > { %781 = vmatpush.bf16.msra.mxu3 %v2500_v8  ;;  %v2471_v20 = vld [vmem:[#allocation7 + $0x8] sm:$0xff]  ;;  %v454_v21 = vld [vmem:[%s379_s26] sm:$0xff]  ;;  %p2911_p1 = scmp.ne.s32.totalorder %s2909_s27, %s2910_s3  ;;  %p2916_p8 = scmp.lt.s32.totalorder %s2914_s15, %s2910_s3 }
  0x56   : > { %531 = vmatpush.bf16.msra.mxu0 %v2475_v4  ;;  %v455_v22 = vld [vmem:[%s379_s26 + $0x8] sm:$0xff]  ;;  %v3217_v27 = vadd.f32 %v456_v23, %v454_v21  ;;  %v2470_v29 = vld [vmem:[#allocation7] sm:$0xff] }
  0x57   : > { %612 = vmatpush.bf16.msra.mxu1 %v2483_v10  ;;  %v2480_v25 = vld [vmem:[#allocation10 + $0x10] sm:$0xff]  ;;  %v3219_v28 = vadd.f32 %v457_v24, %v455_v22  ;;  %v2509_v31 = vld [vmem:[#allocation10 + $0xf8] sm:$0xff]  ;;  %v2487_v32 = vld [vmem:[#allocation10 + $0x48] sm:$0xff]  ;;  %p2912_p3 = pnand %p2911_p1, %p3156_p13  ;;  %p2917_p7 = por %p2916_p8, %p2915_p12 }
  0x58   : > { %701 = vmatpush.bf16.msra.mxu2 %v2491_v11  ;;  %v2488_v26 = vld [vmem:[#allocation10 + $0x50] sm:$0xff]  ;;  %v2478_v34 = vld [vmem:[#allocation10] sm:$0xff]  ;;  %v2507_v37 = vld [vmem:[#allocation10 + $0xe8] sm:$0xff] }
  0x59   : > { %782 = vmatpush.bf16.msra.mxu3 %v2499_v12  ;;  %v460_v33 = vpack.c.bf16 %v3219_v28, %v3217_v27  ;;  %v2508_v35 = vld [vmem:[#allocation10 + $0xf0] sm:$0xff]  ;;  %v2486_v36 = vld [vmem:[#allocation10 + $0x40] sm:$0xff]  ;;  %v2497_v39 = vld [vmem:[#allocation10 + $0x98] sm:$0xff]  ;;  %p2913_p5 = pneg %p2912_p3 }
  0x5a   : > { %532 = vmatpush.bf16.msra.mxu0 %v2474_v9  ;;  %v2506_v38 = vld [vmem:[#allocation10 + $0xe0] sm:$0xff]  ;;  %v2505_v40 = vld [vmem:[#allocation10 + $0xd8] sm:$0xff]  ;;  %v2496_v43 = vld [vmem:[#allocation10 + $0x90] sm:$0xff] }
  0x5b   : > { %613 = vmatpush.bf16.msra.mxu1 %v2482_v14  ;;  %v2517_v41 = vld [vmem:[#allocation10 + $0x138] sm:$0xff]  ;;  %v2504_v44 = vld [vmem:[#allocation10 + $0xd0] sm:$0xff]  ;;  %v2495_v47 = vld [vmem:[#allocation10 + $0x88] sm:$0xff]  ;;  %p2918_p9 = pnand %p2917_p7, %p2913_p5 }
  0x5c   : > { %702 = vmatpush.bf16.msra.mxu2 %v2490_v15  ;;  %v2525_v42 = vld [vmem:[#allocation10 + $0x178] sm:$0xff]  ;;  %v2516_v45 = vld [vmem:[#allocation10 + $0x130] sm:$0xff]  ;;  %v2503_v48 = vld [vmem:[#allocation10 + $0xc8] sm:$0xff] }
  0x5d   : > { %783 = vmatpush.bf16.msra.mxu3 %v2498_v16  ;;  %v2524_v46 = vld [vmem:[#allocation10 + $0x170] sm:$0xff]  ;;  %v2515_v49 = vld [vmem:[#allocation10 + $0x128] sm:$0xff]  ;;  %v2494_v51 = vld [vmem:[#allocation10 + $0x80] sm:$0xff] }
  0x5e   : > { %533 = vmatpush.bf16.msra.mxu0 %v2473_v13  ;;  %v2523_v50 = vld [vmem:[#allocation10 + $0x168] sm:$0xff]  ;;  %v2502_v52 = vld [vmem:[#allocation10 + $0xc0] sm:$0xff]  ;;  %v2513_v55 = vld [vmem:[#allocation10 + $0x118] sm:$0xff] }
  0x5f   : > { %614 = vmatpush.bf16.msra.mxu1 %v2481_v18  ;;  %v2514_v53 = vld [vmem:[#allocation10 + $0x120] sm:$0xff]  ;;  %v2521_v56 = vld [vmem:[#allocation10 + $0x158] sm:$0xff]  ;;  %v2512_v57 = vld [vmem:[#allocation10 + $0x110] sm:$0xff] }
  0x60   : > { %703 = vmatpush.bf16.msra.mxu2 %v2489_v19  ;;  %v2522_v54 = vld [vmem:[#allocation10 + $0x160] sm:$0xff]  ;;  %v2520_v58 = vld [vmem:[#allocation10 + $0x150] sm:$0xff]  ;;  %v2511_v59 = vld [vmem:[#allocation10 + $0x108] sm:$0xff] }
  0x61   : > { %784 = vmatpush.bf16.msra.mxu3 %v2497_v39  ;;  %v2519_v60 = vld [vmem:[#allocation10 + $0x148] sm:$0xff]  ;;  %v2510_v61 = vld [vmem:[#allocation10 + $0x100] sm:$0xff]  ;;  %v2692_v0 = vld [vmem:[#allocation8] ss:$0 sm:$0xff] }
  0x62   : > { %534 = vmatpush.bf16.msra.mxu0 %v2472_v17  ;;  %v2518_v62 = vld [vmem:[#allocation10 + $0x140] sm:$0xff]  ;;  %v2533_v6 = vld [vmem:[#allocation10 + $0x1b8] sm:$0xff]  ;;  %v2532_v9 = vld [vmem:[#allocation10 + $0x1b0] sm:$0xff] }
  0x63   : > { %615 = vmatpush.bf16.msra.mxu1 %v2480_v25  ;;  %v2541_v7 = vld [vmem:[#allocation10 + $0x1f8] sm:$0xff]  ;;  %v2540_v10 = vld [vmem:[#allocation10 + $0x1f0] sm:$0xff]  ;;  %v2531_v12 = vld [vmem:[#allocation10 + $0x1a8] sm:$0xff] }
  0x64   : > { %704 = vmatpush.bf16.msra.mxu2 %v2488_v26  ;;  %v2539_v13 = vld [vmem:[#allocation10 + $0x1e8] sm:$0xff]  ;;  %v2530_v15 = vld [vmem:[#allocation10 + $0x1a0] sm:$0xff]  ;;  %v2549_v17 = vld [vmem:[#allocation10 + $0x238] sm:$0xff] }
  0x65   : > { %785 = vmatpush.bf16.msra.mxu3 %v2496_v43  ;;  %v2538_v16 = vld [vmem:[#allocation10 + $0x1e0] sm:$0xff]  ;;  %v2557_v18 = vld [vmem:[#allocation10 + $0x278] sm:$0xff]  ;;  %v2548_v23 = vld [vmem:[#allocation10 + $0x230] sm:$0xff] }
  0x66   : > { %535 = vmatpush.bf16.msra.mxu0 %v2471_v20  ;;  %v2529_v21 = vld [vmem:[#allocation10 + $0x198] sm:$0xff]  ;;  %v2556_v24 = vld [vmem:[#allocation10 + $0x270] sm:$0xff]  ;;  %v2526_v39 = vld [vmem:[#allocation10 + $0x180] sm:$0xff] }
  0x67   : > { %616 = vmatpush.bf16.msra.mxu1 %v2479_v30  ;;  %v2537_v22 = vld [vmem:[#allocation10 + $0x1d8] sm:$0xff]  ;;  %v2528_v26 = vld [vmem:[#allocation10 + $0x190] sm:$0xff]  ;;  %v2547_v30 = vld [vmem:[#allocation10 + $0x228] sm:$0xff] }
  0x68   : > { %705 = vmatpush.bf16.msra.mxu2 %v2487_v32  ;;  %v2565_v43 = vld [vmem:[#allocation10 + $0x2b8] sm:$0xff] }
  0x69   : > { %786 = vmatpush.bf16.msra.mxu3 %v2495_v47 }
  0x6a   : > { %536 = vmatpush.bf16.msra.mxu0 %v2470_v29  ;;  %v2536_v29 = vld [vmem:[#allocation10 + $0x1d0] sm:$0xff] }
  0x6b   : > { %617 = vmatpush.bf16.msra.mxu1 %v2478_v34  ;;  %v2535_v34 = vld [vmem:[#allocation10 + $0x1c8] sm:$0xff] }
  0x6c   : > { %706 = vmatpush.bf16.msra.mxu2 %v2486_v36  ;;  %v2546_v36 = vld [vmem:[#allocation10 + $0x220] sm:$0xff] }
  0x6d   : > { %537 = vmatmul.bf16.vlgmr.msra.gmra.mxu0 %v460_v33  ;;  %787 = vmatpush.bf16.msra.mxu3 %v2494_v51  ;;  %v2527_v33 = vld [vmem:[#allocation10 + $0x188] sm:$0xff] }
  0x6e   : > { %877 = vmatpush.bf16.msrb.mxu0 %v2509_v31  ;;  %v2555_v31 = vld [vmem:[#allocation10 + $0x268] sm:$0xff] }
  0x6f   : > { %965 = vmatpush.bf16.msrb.mxu1 %v2517_v41  ;;  %v2545_v41 = vld [vmem:[#allocation10 + $0x218] sm:$0xff] }
  0x70   : > { %1046 = vmatpush.bf16.msrb.mxu2 %v2525_v42  ;;  %v2553_v42 = vld [vmem:[#allocation10 + $0x258] sm:$0xff] }
  0x71   : > { %1190 = vmatpush.bf16.msrb.mxu3 %v2533_v6 }
  0x72   : > { %878 = vmatpush.bf16.msrb.mxu0 %v2508_v35 }
  0x73   : > { %966 = vmatpush.bf16.msrb.mxu1 %v2516_v45 }
  0x74   : > { %1047 = vmatpush.bf16.msrb.mxu2 %v2524_v46  ;;  %v2573_v46 = vld [vmem:[#allocation10 + $0x2f8] sm:$0xff] }
  0x75   : > { %1191 = vmatpush.bf16.msrb.mxu3 %v2532_v9 }
  0x76   : > { %879 = vmatpush.bf16.msrb.mxu0 %v2507_v37  ;;  %v2554_v37 = vld [vmem:[#allocation10 + $0x260] sm:$0xff] }
  0x77   : > { %967 = vmatpush.bf16.msrb.mxu1 %v2515_v49 }
  0x78   : > { %1048 = vmatpush.bf16.msrb.mxu2 %v2523_v50 }
  0x79   : > { %1192 = vmatpush.bf16.msrb.mxu3 %v2531_v12  ;;  %v2550_v12 = vld [vmem:[#allocation10 + $0x240] sm:$0xff] }
  0x7a   : > { %880 = vmatpush.bf16.msrb.mxu0 %v2506_v38 }
  0x7b   : > { %968 = vmatpush.bf16.msrb.mxu1 %v2514_v53  ;;  %v2552_v53 = vld [vmem:[#allocation10 + $0x250] sm:$0xff] }
  0x7c   : > { %1049 = vmatpush.bf16.msrb.mxu2 %v2522_v54  ;;  %v2564_v54 = vld [vmem:[#allocation10 + $0x2b0] sm:$0xff] }
  0x7d   : > { %1193 = vmatpush.bf16.msrb.mxu3 %v2530_v15  ;;  %v2562_v15 = vld [vmem:[#allocation10 + $0x2a0] sm:$0xff] }
  0x7e   : > { %881 = vmatpush.bf16.msrb.mxu0 %v2505_v40  ;;  %v2534_v40 = vld [vmem:[#allocation10 + $0x1c0] sm:$0xff] }
  0x7f   : > { %969 = vmatpush.bf16.msrb.mxu1 %v2513_v55 }
  0x80   : > { %1050 = vmatpush.bf16.msrb.mxu2 %v2521_v56 }
  0x81   : > { %1194 = vmatpush.bf16.msrb.mxu3 %v2529_v21 }
  0x82   : > { %882 = vmatpush.bf16.msrb.mxu0 %v2504_v44 }
  0x83   : > { %970 = vmatpush.bf16.msrb.mxu1 %v2512_v57  ;;  %v2694_v57 = vld [vmem:[%s3346_s5 + $0x1] ss:$0 sm:$0xff] }
  0x84   : > { %1051 = vmatpush.bf16.msrb.mxu2 %v2520_v58  ;;  %v2572_v58 = vld [vmem:[#allocation10 + $0x2f0] sm:$0xff] }
  0x85   : > { %1195 = vmatpush.bf16.msrb.mxu3 %v2528_v26 }
  0x86   : > { %883 = vmatpush.bf16.msrb.mxu0 %v2503_v48 }
  0x87   : > { %971 = vmatpush.bf16.msrb.mxu1 %v2511_v59 }
  0x88   : > { %1052 = vmatpush.bf16.msrb.mxu2 %v2519_v60 }
  0x89   : > { %1196 = vmatpush.bf16.msrb.mxu3 %v2527_v33 }
  0x8a   : > { %884 = vmatpush.bf16.msrb.mxu0 %v2502_v52  ;;  %v2544_v52 = vld [vmem:[#allocation10 + $0x210] sm:$0xff] }
  0x8b   : > { %972 = vmatpush.bf16.msrb.mxu1 %v2510_v61 }
  0x8c   : > { %1053 = vmatpush.bf16.msrb.mxu2 %v2518_v62 }
  0x8d   : > { %1197 = vmatpush.bf16.msrb.mxu3 %v2526_v39 }
  0x8e   : > { %1278 = vmatpush.bf16.msra.mxu0 %v2541_v7 }
  0x92   : > { %1279 = vmatpush.bf16.msra.mxu0 %v2540_v10  ;;  %v2542_v10 = vld [vmem:[#allocation10 + $0x200] sm:$0xff] }
  0x96   : > { %1280 = vmatpush.bf16.msra.mxu0 %v2539_v13 }
  0x9a   : > { %1281 = vmatpush.bf16.msra.mxu0 %v2538_v16  ;;  %v2570_v16 = vld [vmem:[#allocation10 + $0x2e0] sm:$0xff] }
  0x9e   : > { %1282 = vmatpush.bf16.msra.mxu0 %v2537_v22 }
  0xa2   : > { %1283 = vmatpush.bf16.msra.mxu0 %v2536_v29 }
  0xa6   : > { %1284 = vmatpush.bf16.msra.mxu0 %v2535_v34 }
  0xaa   : > { %1285 = vmatpush.bf16.msra.mxu0 %v2534_v40 }
  0xea   : > { %v538_v63 = vpop.f32.mrf.mxu0 }
  0xeb   : > { %v3223_v3 = vadd.f32 %v2692_v0, %v538_v63  ;;  %v2543_v63 = vld [vmem:[#allocation10 + $0x208] sm:$0xff] }
  0xf2   : > { %v540_v1 = vpop.f32.mrf.mxu0 }
  0xf3   : > { %v541_v2 = vadd.f32 %v2692_v0, %v540_v1  ;;  %v2551_v0 = vld [vmem:[#allocation10 + $0x248] sm:$0xff] }
  0xf4   : > { %v2563_v1 = vld [vmem:[#allocation10 + $0x2a8] sm:$0xff] }
  0xf5   : > { %v3225_v4 = vmul.f32 0.0, %v541_v2  ;;  %v2571_v2 = vld [vmem:[#allocation10 + $0x2e8] sm:$0xff] }
  0xf7   : > { %v545_v5 = vpack.c.bf16 %v3225_v4, %v3223_v3 }
  0xf9   : > { %618 = vmatmul.bf16.vlgmr.msra.gmra.mxu1 %v545_v5  ;;  %707 = vmatmul.bf16.vlgmr.msra.gmra.mxu2 %v545_v5 }
  0xfa   : > { %788 = vmatmul.bf16.vlgmr.msra.gmra.mxu3 %v545_v5  ;;  %885 = vmatmul.bf16.vlgmr.msrb.gmra.mxu0 %v545_v5 }
  0xfb   : > { %1359 = vmatpush.bf16.msra.mxu1 %v2549_v17  ;;  %1456 = vmatpush.bf16.msra.mxu2 %v2557_v18  ;;  %v2561_v17 = vld [vmem:[#allocation10 + $0x298] sm:$0xff] }
  0xfc   : > { %1544 = vmatpush.bf16.msra.mxu3 %v2565_v43  ;;  %1625 = vmatpush.bf16.msrb.mxu0 %v2573_v46  ;;  %v2569_v18 = vld [vmem:[#allocation10 + $0x2d8] sm:$0xff] }
  0xff   : > { %1360 = vmatpush.bf16.msra.mxu1 %v2548_v23  ;;  %1457 = vmatpush.bf16.msra.mxu2 %v2556_v24  ;;  %v2560_v23 = vld [vmem:[#allocation10 + $0x290] sm:$0xff] }
 0x100   : > { %1545 = vmatpush.bf16.msra.mxu3 %v2564_v54  ;;  %1626 = vmatpush.bf16.msrb.mxu0 %v2572_v58  ;;  %v2568_v24 = vld [vmem:[#allocation10 + $0x2d0] sm:$0xff] }
 0x103   : > { %1361 = vmatpush.bf16.msra.mxu1 %v2547_v30  ;;  %1458 = vmatpush.bf16.msra.mxu2 %v2555_v31  ;;  %v2559_v30 = vld [vmem:[#allocation10 + $0x288] sm:$0xff] }
 0x104   : > { %1546 = vmatpush.bf16.msra.mxu3 %v2563_v1  ;;  %1627 = vmatpush.bf16.msrb.mxu0 %v2571_v2  ;;  %v2567_v31 = vld [vmem:[#allocation10 + $0x2c8] sm:$0xff] }
 0x107   : > { %1362 = vmatpush.bf16.msra.mxu1 %v2546_v36  ;;  %1459 = vmatpush.bf16.msra.mxu2 %v2554_v37  ;;  %v2558_v37 = vld [vmem:[#allocation10 + $0x280] sm:$0xff] }
 0x108   : > { %1547 = vmatpush.bf16.msra.mxu3 %v2562_v15  ;;  %1628 = vmatpush.bf16.msrb.mxu0 %v2570_v16  ;;  %v2581_v16 = vld [vmem:[#allocation11 + $0x38] sm:$0xff] }
 0x109   : > { %973 = vmatmul.bf16.vlgmr.msrb.gmra.mxu1 %v545_v5  ;;  %1054 = vmatmul.bf16.vlgmr.msrb.gmra.mxu2 %v545_v5 }
 0x10b   : > { %1363 = vmatpush.bf16.msra.mxu1 %v2545_v41  ;;  %1460 = vmatpush.bf16.msra.mxu2 %v2553_v42 }
 0x10c   : > { %1548 = vmatpush.bf16.msra.mxu3 %v2561_v17  ;;  %1629 = vmatpush.bf16.msrb.mxu0 %v2569_v18  ;;  %v2580_v17 = vld [vmem:[#allocation11 + $0x30] sm:$0xff] }
 0x10f   : > { %1364 = vmatpush.bf16.msra.mxu1 %v2544_v52  ;;  %1461 = vmatpush.bf16.msra.mxu2 %v2552_v53 }
 0x110   : > { %1549 = vmatpush.bf16.msra.mxu3 %v2560_v23  ;;  %1630 = vmatpush.bf16.msrb.mxu0 %v2568_v24 }
 0x113   : > { %1365 = vmatpush.bf16.msra.mxu1 %v2543_v63  ;;  %1462 = vmatpush.bf16.msra.mxu2 %v2551_v0 }
 0x114   : > { %1550 = vmatpush.bf16.msra.mxu3 %v2559_v30  ;;  %1631 = vmatpush.bf16.msrb.mxu0 %v2567_v31 }
 0x117   : > { %1366 = vmatpush.bf16.msra.mxu1 %v2542_v10  ;;  %1463 = vmatpush.bf16.msra.mxu2 %v2550_v12 }
 0x118   : > { %1551 = vmatpush.bf16.msra.mxu3 %v2558_v37  ;;  %v2576_v37 = vld [vmem:[#allocation11 + $0x10] sm:$0xff] }
 0x11b   : > { %1772 = vmatpush.bf16.msrb.mxu1 %v2581_v16 }
 0x11f   : > { %1773 = vmatpush.bf16.msrb.mxu1 %v2580_v17 }
 0x176   : > { %v3229_v8 = vpop.f32.mrf.mxu1 }
 0x177   : > { %v886_v19 = vpop.f32.mrf.mxu0 }
 0x178   : > { %v895_v44 = vrot.slane %v886_v19, 7 }
 0x17c   : > { %v3231_v11 = vpop.f32.mrf.mxu2 }
 0x17d   : > { %v789_v13 = vpop.f32.mrf.mxu3 }
 0x17e   : > { %v3233_v14 = vpop.f32.mrf.mxu1  ;;  %v797_v34 = vrot.slane %v789_v13, 1 }
 0x17f   : > { %v888_v35 = vpop.f32.mrf.mxu0  ;;  %v625_v29 = vrot.slane %v3233_v14, 7 }
 0x180   : > { %v892_v38 = vrot.slane %v888_v35, 7 }
 0x182   : > { %v899_v48 = vsel %vm628_vm0, %v892_v38, %v895_v44  ;;  %v896_v50 = vsel %vm628_vm0, %v895_v44, %v892_v38  ;;  %v2566_v38 = vld [vmem:[#allocation10 + $0x2c0] sm:$0xff] }
 0x183   : > { %1632 = vmatpush.bf16.msrb.mxu0 %v2566_v38 }
 0x184   : > { %v3235_v20 = vpop.f32.mrf.mxu2 }
 0x185   : > { %v791_v26 = vpop.f32.mrf.mxu3 }
 0x186   : > { %v974_v25 = vpop.f32.mrf.mxu1  ;;  %v798_v33 = vrot.slane %v791_v26, 1 }
 0x187   : > { %v979_v55 = vadd.f32 %v974_v25, %v899_v48 }
 0x188   : > { %v799_v14 = vsel %vm796_vm1, %v797_v34, %v798_v33  ;;  %v803_v44 = vsel %vm796_vm1, %v798_v33, %v797_v34  ;;  %v2696_v34 = vld [vmem:[%s3346_s5 + $0x3] ss:$0 sm:$0xff] }
 0x18c   : > { %v1055_v32 = vpop.f32.mrf.mxu2 }
 0x18d   : > { %v1062_v49 = vrot.slane %v1055_v32, 1  ;;  %v629_v32 = vrot.slane %v3229_v8, 7 }
 0x18e   : > { %v976_v45 = vpop.f32.mrf.mxu1 }
 0x18f   : > { %v980_v56 = vadd.f32 %v976_v45, %v896_v50  ;;  %v633_v35 = vsel %vm628_vm0, %v625_v29, %v629_v32  ;;  %v630_v40 = vsel %vm628_vm0, %v629_v32, %v625_v29  ;;  %v2577_v32 = vld [vmem:[#allocation11 + $0x18] sm:$0xff] }
 0x190   : > { %v713_v42 = vadd.f32 %v3231_v11, %v633_v35  ;;  %v714_v43 = vadd.f32 %v3235_v20, %v630_v40 }
 0x192   : > { %v804_v46 = vadd.f32 %v799_v14, %v713_v42  ;;  %v805_v11 = vadd.f32 %v803_v44, %v714_v43 }
 0x194   : > { %v1057_v47 = vpop.f32.mrf.mxu2 }
 0x195   : > { %v1063_v51 = vrot.slane %v1057_v47, 1 }
 0x197   : > { %v1064_v59 = vsel %vm796_vm1, %v1062_v49, %v1063_v51  ;;  %v1068_v60 = vsel %vm796_vm1, %v1063_v51, %v1062_v49  ;;  %v2693_v49 = vld [vmem:[%s3346_s5] ss:$0 sm:$0xff] }
 0x198   : > { %v1069_v61 = vadd.f32 %v1064_v59, %v979_v55  ;;  %v1070_v62 = vadd.f32 %v1068_v60, %v980_v56  ;;  %v811_v60 = vadd.f32 %v2693_v49, %v805_v11 }
 0x19a   : > { %v1076_v5 = vadd.f32 %v2694_v57, %v1069_v61  ;;  %v1077_v6 = vadd.f32 %v2694_v57, %v1070_v62  ;;  %v810_v57 = vadd.f32 %v2693_v49, %v804_v46  ;;  %v2574_v46 = vld [vmem:[#allocation11] sm:$0xff] }
 0x19c   : > { %v2231_v7 = vmul.f32 -1.442695, %v1076_v5  ;;  %v2232_v9 = vmul.f32 -1.442695, %v1077_v6 }
 0x19e   : > { %2698 = vpow2.f32 %v2231_v7 }
 0x19f   : > { %2700 = vpow2.f32 %v2232_v9 }
 0x1a4   : > { %v2699_v19 = vpop.eup %2698 }
 0x1a5   : > { %v2701_v21 = vpop.eup %2700  ;;  %v1084_v22 = vadd.f32 1.0, %v2699_v19 }
 0x1a6   : > { %v1085_v25 = vadd.f32 1.0, %v2701_v21  ;;  %v2579_v21 = vld [vmem:[#allocation11 + $0x28] sm:$0xff] }
 0x1a7   : > { %2702 = vrcp.f32 %v1084_v22  ;;  %v1097_v47 = vand.u32 2147483648, %v1084_v22  ;;  %v1095_v51 = vand.u32 2147483647, %v1084_v22  ;;  %vm1091_vm4 = vweird.f32 %v1084_v22  ;;  %1774 = vmatpush.bf16.msrb.mxu1 %v2579_v21 }
 0x1a8   : > { %2704 = vrcp.f32 %v1085_v25  ;;  %v1112_v52 = vand.u32 2147483648, %v1085_v25  ;;  %v1110_v20 = vand.u32 2147483647, %v1085_v25  ;;  %vm1106_vm6 = vweird.f32 %v1085_v25 }
 0x1a9   : > { %v1098_v55 = vor.u32 1.1754944e-38, %v1097_v47  ;;  %vm1096_vm7 = vcmp.eq.f32.partialorder %v1095_v51, 8.507059e+37 }
 0x1aa   : > { %v1113_v58 = vor.u32 1.1754944e-38, %v1112_v52  ;;  %vm1111_vm9 = vcmp.eq.f32.partialorder %v1110_v20, 8.507059e+37 }
 0x1ad   : > { %v2703_v36 = vpop.eup %2702 }
 0x1ae   : > { %v2705_v39 = vpop.eup %2704  ;;  %v1087_v41 = vmul.f32 %v2703_v36, %v1084_v22  ;;  %vm1092_vm2 = vweird.f32 %v2703_v36 }
 0x1af   : > { %v1102_v8 = vmul.f32 %v2705_v39, %v1085_v25  ;;  %vm1107_vm3 = vweird.f32 %v2705_v39  ;;  %vm1093_vm5 = vmor %vm1091_vm4, %vm1092_vm2  ;;  %v2578_v25 = vld [vmem:[#allocation11 + $0x20] sm:$0xff] }
 0x1b0   : > { %v1088_v45 = vsub.f32 1.0, %v1087_v41  ;;  %vm1108_vm8 = vmor %vm1106_vm6, %vm1107_vm3  ;;  %1775 = vmatpush.bf16.msrb.mxu1 %v2578_v25 }
 0x1b1   : > { %v1103_v48 = vsub.f32 1.0, %v1102_v8  ;;  %v2575_v8 = vld [vmem:[#allocation11 + $0x8] sm:$0xff] }
 0x1b2   : > { %v1089_v50 = vmul.f32 %v2703_v36, %v1088_v45 }
 0x1b3   : > { %v1104_v53 = vmul.f32 %v2705_v39, %v1103_v48 }
 0x1b4   : > { %v1090_v54 = vadd.f32 %v2703_v36, %v1089_v50  ;;  %1776 = vmatpush.bf16.msrb.mxu1 %v2577_v32 }
 0x1b5   : > { %v1105_v56 = vadd.f32 %v2705_v39, %v1104_v53 }
 0x1b6   : > { %v1094_v59 = vsel %vm1093_vm5, %v2703_v36, %v1090_v54 }
 0x1b7   : > { %v1099_v61 = vsel %vm1096_vm7, %v1098_v55, %v1094_v59  ;;  %v1109_v62 = vsel %vm1108_vm8, %v2705_v39, %v1105_v56 }
 0x1b8   : > { %v1114_v63 = vsel %vm1111_vm9, %v1113_v58, %v1109_v62  ;;  %v1116_v0 = vmul.f32 %v1099_v61, %v810_v57  ;;  %1777 = vmatpush.bf16.msrb.mxu1 %v2576_v37 }
 0x1b9   : > { %v1117_v1 = vmul.f32 %v1114_v63, %v811_v60 }
 0x1ba   : > { %v1118_v2 = vadd.f32 %v1116_v0, %v3223_v3 }
 0x1bb   : > { %v1119_v5 = vadd.f32 %v1117_v1, %v3225_v4 }
 0x1bc   : > { %v3257_v7 = vmul.f32 0.70710677, %v1118_v2  ;;  %1778 = vmatpush.bf16.msrb.mxu1 %v2575_v8 }
 0x1bd   : > { %v1121_v6 = vmul.f32 0.70710677, %v1119_v5 }
 0x1bf   : > { %v3259_v9 = vmul.f32 0.0, %v1121_v6 }
 0x1c0   : > { %1779 = vmatpush.bf16.msrb.mxu1 %v2574_v46 }
 0x1c1   : > { %v1124_v10 = vpack.c.bf16 %v3259_v9, %v3257_v7 }
 0x1c3   : > { %1198 = vmatmul.bf16.vlgmr.msrb.gmra.mxu3 %v1124_v10  ;;  %1286 = vmatmul.bf16.vlgmr.msra.gmra.mxu0 %v1124_v10 }
 0x1c4   : > { %1367 = vmatmul.bf16.vlgmr.msra.gmra.mxu1 %v1124_v10  ;;  %1464 = vmatmul.bf16.vlgmr.msra.gmra.mxu2 %v1124_v10 }
 0x1d3   : > { %1552 = vmatmul.bf16.vlgmr.msra.gmra.mxu3 %v1124_v10  ;;  %1633 = vmatmul.bf16.vlgmr.msrb.gmra.mxu0 %v1124_v10 }
 0x240   : > { %v1287_v12 = vpop.f32.mrf.mxu0 }
 0x241   : > { %v1368_v47 = vpop.f32.mrf.mxu1 }
 0x242   : > { %v1375_v59 = vrot.slane %v1368_v47, 1 }
 0x246   : > { %v1199_v13 = vpop.f32.mrf.mxu3 }
 0x247   : > { %v1465_v15 = vpop.f32.mrf.mxu2  ;;  %v1208_v11 = vrot.slane %v1199_v13, 7 }
 0x248   : > { %v1289_v3 = vpop.f32.mrf.mxu0  ;;  %v1474_v24 = vrot.slane %v1465_v15, 7  ;;  %v2695_v15 = vld [vmem:[%s3346_s5 + $0x2] ss:$0 sm:$0xff] }
 0x249   : > { %v1370_v20 = vpop.f32.mrf.mxu1 }
 0x24a   : > { %v1376_v57 = vrot.slane %v1370_v20, 1 }
 0x24c   : > { %v1377_v5 = vsel %vm796_vm1, %v1375_v59, %v1376_v57  ;;  %v1381_v10 = vsel %vm796_vm1, %v1376_v57, %v1375_v59 }
 0x24e   : > { %v1201_v4 = vpop.f32.mrf.mxu3 }
 0x24f   : > { %v1467_v19 = vpop.f32.mrf.mxu2  ;;  %v1205_v51 = vrot.slane %v1201_v4, 7 }
 0x250   : > { %v1634_v18 = vpop.f32.mrf.mxu0  ;;  %v1471_v22 = vrot.slane %v1467_v19, 7 }
 0x251   : > { %v1641_v29 = vrot.slane %v1634_v18, 1  ;;  %v1212_v54 = vsel %vm628_vm0, %v1205_v51, %v1208_v11  ;;  %v1209_v56 = vsel %vm628_vm0, %v1208_v11, %v1205_v51 }
 0x252   : > { %v1478_v30 = vsel %vm628_vm0, %v1471_v22, %v1474_v24  ;;  %v1475_v38 = vsel %vm628_vm0, %v1474_v24, %v1471_v22  ;;  %v1292_v60 = vadd.f32 %v1287_v12, %v1212_v54  ;;  %v1293_v62 = vadd.f32 %v1289_v3, %v1209_v56 }
 0x254   : > { %v1382_v13 = vadd.f32 %v1377_v5, %v1292_v60  ;;  %v1383_v12 = vadd.f32 %v1381_v10, %v1293_v62 }
 0x256   : > { %v1553_v23 = vpop.f32.mrf.mxu3  ;;  %v1389_v22 = vadd.f32 %v2695_v15, %v1382_v13  ;;  %v1390_v25 = vadd.f32 %v2695_v15, %v1383_v12 }
 0x257   : > { %v1558_v33 = vadd.f32 %v1553_v23, %v1478_v30 }
 0x258   : > { %v1636_v26 = vpop.f32.mrf.mxu0 }
 0x259   : > { %v1642_v31 = vrot.slane %v1636_v26, 1 }
 0x25b   : > { %v1643_v35 = vsel %vm796_vm1, %v1641_v29, %v1642_v31  ;;  %v1647_v41 = vsel %vm796_vm1, %v1642_v31, %v1641_v29 }
 0x25c   : > { %v1648_v36 = vadd.f32 %v1643_v35, %v1558_v33 }
 0x25e   : > { %v1555_v39 = vpop.f32.mrf.mxu3  ;;  %v1655_v40 = vadd.f32 %v2696_v34, %v1648_v36 }
 0x25f   : > { %v1559_v14 = vadd.f32 %v1555_v39, %v1475_v38  ;;  %v2697_v38 = vld [vmem:[%s3348_s7] ss:$0 sm:$0xff] }
 0x260   : > { %v2427_v42 = vmul.f32 -1.442695, %v1655_v40 }
 0x261   : > { %v1649_v43 = vadd.f32 %v1647_v41, %v1559_v14 }
 0x262   : > { %2706 = vpow2.f32 %v2427_v42 }
 0x263   : > { %v1656_v44 = vadd.f32 %v2696_v34, %v1649_v43 }
 0x265   : > { %v2428_v45 = vmul.f32 -1.442695, %v1656_v44 }
 0x267   : > { %2708 = vpow2.f32 %v2428_v45 }
 0x268   : > { %v2707_v48 = vpop.eup %2706 }
 0x269   : > { %v1663_v49 = vadd.f32 1.0, %v2707_v48 }
 0x26b   : > { %2710 = vrcp.f32 %v1663_v49  ;;  %v1676_v0 = vand.u32 2147483648, %v1663_v49  ;;  %v1674_v2 = vand.u32 2147483647, %v1663_v49  ;;  %vm1670_vm11 = vweird.f32 %v1663_v49 }
 0x26d   : > { %v2709_v50 = vpop.eup %2708  ;;  %v1677_v4 = vor.u32 1.1754944e-38, %v1676_v0  ;;  %vm1675_vm13 = vcmp.eq.f32.partialorder %v1674_v2, 8.507059e+37 }
 0x26e   : > { %v1664_v52 = vadd.f32 1.0, %v2709_v50 }
 0x270   : > { %2712 = vrcp.f32 %v1664_v52  ;;  %v1691_v17 = vand.u32 2147483648, %v1664_v52  ;;  %v1689_v19 = vand.u32 2147483647, %v1664_v52  ;;  %vm1685_vm15 = vweird.f32 %v1664_v52 }
 0x271   : > { %v2711_v53 = vpop.eup %2710 }
 0x272   : > { %v1666_v55 = vmul.f32 %v2711_v53, %v1663_v49  ;;  %vm1671_vm10 = vweird.f32 %v2711_v53  ;;  %v1692_v24 = vor.u32 1.1754944e-38, %v1691_v17  ;;  %vm1690_vm1 = vcmp.eq.f32.partialorder %v1689_v19, 8.507059e+37 }
 0x273   : > { %vm1672_vm12 = vmor %vm1670_vm11, %vm1671_vm10 }
 0x274   : > { %v1667_v58 = vsub.f32 1.0, %v1666_v55 }
 0x276   : > { %v2713_v61 = vpop.eup %2712  ;;  %v1668_v63 = vmul.f32 %v2711_v53, %v1667_v58 }
 0x277   : > { %v1681_v1 = vmul.f32 %v2713_v61, %v1664_v52  ;;  %vm1686_vm14 = vweird.f32 %v2713_v61 }
 0x278   : > { %v1669_v6 = vadd.f32 %v2711_v53, %v1668_v63  ;;  %vm1687_vm0 = vmor %vm1685_vm15, %vm1686_vm14 }
 0x279   : > { %v1682_v16 = vsub.f32 1.0, %v1681_v1 }
 0x27a   : > { %v1673_v3 = vsel %vm1672_vm12, %v2711_v53, %v1669_v6 }
 0x27b   : > { %v1683_v18 = vmul.f32 %v2713_v61, %v1682_v16  ;;  %v1678_v21 = vsel %vm1675_vm13, %v1677_v4, %v1673_v3 }
 0x27c   : > { %v1695_v29 = vmul.f32 %v1678_v21, %v1389_v22 }
 0x27d   : > { %v1684_v23 = vadd.f32 %v2713_v61, %v1683_v18 }
 0x27e   : > { %v1697_v32 = vadd.f32 %v1695_v29, %v3257_v7 }
 0x27f   : > { %v1688_v26 = vsel %vm1687_vm0, %v2713_v61, %v1684_v23 }
 0x280   : > { %v1693_v30 = vsel %vm1690_vm1, %v1692_v24, %v1688_v26  ;;  %v1699_v35 = vmul.f32 0.70710677, %v1697_v32 }
 0x281   : > { %v1696_v31 = vmul.f32 %v1693_v30, %v1390_v25 }
 0x283   : > { %v1698_v33 = vadd.f32 %v1696_v31, %v3259_v9 }
 0x285   : > { %v1700_v34 = vmul.f32 0.70710677, %v1698_v33 }
 0x287   : > { %v1702_v36 = vmul.f32 0.0, %v1700_v34 }
 0x289   : > { %v1703_v37 = vpack.c.bf16 %v1702_v36, %v1699_v35 }
 0x28b   : > { %1780 = vmatmul.bf16.vlgmr.msrb.gmra.mxu1 %v1703_v37 }
 0x308   : > { %v1781_v39 = vpop.f32.mrf.mxu1 }
 0x309   : > { %v1782_v40 = vadd.f32 %v2697_v38, %v1781_v39 }
 0x30b   : > { %1786 = vst [vmem:[%s437_s17] sm:$0xff] %v1782_v40  ;;  %v1788_v7 = vadd.f32 %v1782_v40, %v3217_v27 }
 0x30d   : > { %v1790_v9 = vmul.f32 0.70710677, %v1788_v7 }
 0x30f   : > { %1792 = vst [vmem:[%s3289_s22] sm:$0xff] %v1790_v9 }
 0x310   : > { %v1783_v14 = vpop.f32.mrf.mxu1 }
 0x311   : > { %v1784_v41 = vadd.f32 %v2697_v38, %v1783_v14 }
 0x313   : > { %1787 = vst [vmem:[%s437_s17 + $0x8] sm:$0xff] %v1784_v41  ;;  %v1789_v27 = vadd.f32 %v1784_v41, %v3219_v28 }
 0x314   : > { %2921 = shalt.err (!%p2918_p9)
}
 0x315   : > { %s3015_s17 = smov 128   ;;  %s3016_s28 = smov 8   ;;  %v1791_v28 = vmul.f32 0.70710677, %v1789_v27 }
 0x316   : > { %2606 = dma.vmem_to_hbm [thread:$0]  (%p3156_p13), %s1813_s13, 256, %s1815_s23, %s1795_s2, %s3015_s17, %s3015_s17, %s3016_s28  }
 0x317   : > { %1793 = vst [vmem:[%s3289_s22 + $0x8] sm:$0xff] %v1791_v28  ;;  %s1800_s26 = scalar_lea.sflag [#allocation15], %s3190_s14  ;;  %s2936_s1 = sshra.s32 %s1832_s18, 4  ;;  %s2937_s1 = int_to_ptr.hbm [resolvable:$true] %s2936_s1 }
 0x318   : > { %s2938_s16 = scalar_lea.hbm %s2937_s1, 16  ;;  %s2942_s15 = scalar_lea.hbm %s3350_s9, 32 }
 0x319   : > { %p2939_p10 = scmp.ne.s32.totalorder %s2937_s1, %s2938_s16  ;;  %p2943_p2 = scmp.lt.s32.totalorder %s2937_s1, %s3350_s9 }
 0x31a   : > { %p2944_p6 = scmp.lt.s32.totalorder %s2942_s15, %s2938_s16 }
 0x31b   : > { %p2940_p11 = pnand %p2939_p10, %p3156_p13 }
 0x31c   : > { %p2945_p1 = por %p2944_p6, %p2943_p2 }
 0x31d   : > { %p2941_p0 = pneg %p2940_p11 }
 0x31f   : > { %p2946_p3 = pnand %p2945_p1, %p2941_p0 }
 0x321   : > { %2949 = shalt.err (!%p2946_p3)
}
 0x322   : > { %2607 = dma.vmem_to_hbm [thread:$0]  (%p3156_p13), %s3296_s20, 256, %s1832_s18, %s1800_s26, %s3015_s17, %s3015_s17, %s3016_s28  }
 0x323 PF: > { %s1846_s14 = sand.u32 1, %s2992_s30   ;;  %p3369_p5 = scmp.ge.s32.totalorder %s3004_s12, 2 }
 0x324   : > { %s1847_s13 = scalar_lea.sflag [#allocation4], %s1846_s14 }
 0x325   : > { %p2631_p12 = pnand %p3369_p5, %p3161_p4 }
 0x327   : > { %p2632_p8 = pneg %p2631_p12 }
 0x329   : > { %2983 = dma.done.wait (%p2632_p8), %s1847_s13, 256  }
 0x32a   : > { %2985 = vsyncadd (%p2632_p8), %s1847_s13, 4294967040  ;;  %s1857_s0 = scalar_lea.sflag [#allocation15], %s1846_s14 }
 0x32b   : > { %2987 = dma.done.wait (%p2632_p8), %s1857_s0, 256  }
 0x32c   : > { %2989 = vsyncadd (%p2632_p8), %s1857_s0, 4294967040  ;;  %p29_p13 = scmp.ge.s32.totalorder %s3136_s21, 4   ;;  %s3370_s30 = smov %s2996_s10 }
 0x32d   : > { %s3371_s10 = smov %s3000_s11  ;;  %s3372_s11 = smov %s3148_s24 }
 0x32e   : > { %s3373_s12 = smov %s3136_s21  ;;  %31 = sbr.rel (!%p29_p13) target bundleno = 15 (0xf), region = 148 }
 0x333   :  { %1863 = vsyncpa [#allocation3], 1 }
 0x334   :  { %1865 = vsyncpa [#allocation3 + $0x1], 1 }
 0x335   :  { %1866 = vsyncpa [#allocation6], 1 }
 0x336   :  { %1867 = vsyncpa [#allocation9], 1 }
 0x337   :  { %1868 = vsyncpa [#allocation12], 1 }
 0x338   :  { %1869 = vsyncpa [#allocation4], 1 }
 0x339   :  { %1871 = vsyncpa [#allocation4 + $0x1], 1 }
 0x33a   :  { %1872 = vsyncpa [#allocation15], 1 }
 0x33b   :  { %1874 = vsyncpa [#allocation15 + $0x1], 1 }

// kernel: tpu_custom_call.1
= control target key start
LH: loop header
LB: loop body
LE: loop exit
PB: predicated region body
PF: predicated region fallthrough
CT: control target
= control target key end

     0   :  { %s3341_s0 = inlined_call_operand.hbm [shape: f32[2,16,128], index: 0, kind: input, shape index: {}]   ;;  %s3342_s1 = inlined_call_operand.hbm [shape: f32[16,128], index: 1, kind: input, shape index: {}]   ;;  %s3343_s2 = inlined_call_operand.hbm [shape: bf16[128,128], index: 2, kind: input, shape index: {}]   ;;  %s3344_s3 = inlined_call_operand.hbm [shape: f32[1,128], index: 3, kind: input, shape index: {}]   ;;  %s3345_s4 = inlined_call_operand.hbm [shape: bf16[12,128,128], index: 4, kind: input, shape index: {}]   ;;  %s3346_s5 = inlined_call_operand.vmem [shape: f32[4,1,128], index: 5, kind: input, shape index: {}]   ;;  %s3347_s6 = inlined_call_operand.hbm [shape: bf16[128,128], index: 6, kind: input, shape index: {}]   ;;  %s3348_s7 = inlined_call_operand.vmem [shape: f32[1,128], index: 7, kind: input, shape index: {}]   ;;  %s3349_s8 = inlined_call_operand.hbm [shape: f32[2,16,128], index: 8, kind: output, shape index: {0}]   ;;  %s3350_s9 = inlined_call_operand.hbm [shape: f32[2,16,128], index: 9, kind: output, shape index: {1}]  }
   0x1   :  { %3353 = sst [smem:[#allocation22_spill]] %s3341_s0 }
   0x2   :  { %3354 = sst [smem:[#allocation23_spill]] %s3342_s1 }
   0x3   :  { %3355 = sst [smem:[#allocation24_spill]] %s3343_s2 }
   0x4   :  { %3356 = sst [smem:[#allocation25_spill]] %s3344_s3 }
   0x5   :  { %15 = vsyncpa [#allocation3], 0 }
   0x6   :  { %17 = vsyncpa [#allocation3 + $0x1], 0 }
   0x7   :  { %18 = vsyncpa [#allocation6], 0 }
   0x8   :  { %19 = vsyncpa [#allocation9], 0 }
   0x9   :  { %20 = vsyncpa [#allocation12], 0 }
   0xa   :  { %21 = vsyncpa [#allocation4], 0 }
   0xb   :  { %23 = vsyncpa [#allocation4 + $0x1], 0 }
   0xc   :  { %24 = vsyncpa [#allocation15], 0 }
   0xd   :  { %26 = vsyncpa [#allocation15 + $0x1], 0  ;;  %s3067_s30 = smov 0   ;;  %s3069_s10 = smov 0  }
   0xe   :  { %s3071_s11 = smov 0   ;;  %s3073_s12 = smov 0  }
   0xf LB: > { %s3357_s1 = sld [smem:[#allocation23_spill]]  ;;  %s3091_s16 = sadd.s32 4294967295, %s3004_s12   ;;  %s3004_s12 = sphi %s3073_s12, %s3373_s12   ;;  %s3000_s11 = sphi %s3071_s11, %s3372_s11   ;;  %s2996_s10 = sphi %s3069_s10, %s3371_s10   ;;  %s2992_s30 = sphi %s3067_s30, %s3370_s30  }
  0x10   : > { %p1987_p0 = scmp.ge.s32.totalorder %s3004_s12, 1  ;;  %p53_p1 = scmp.eq.s32.totalorder %s3091_s16, 0 }
  0x11   : > { %p262_p2 = scmp.lt.s32.totalorder %s3004_s12, 3  ;;  %s3006_s18 = smov [#allocation5]  }
  0x12   : > { %s275_s19 = sshll.u32 %s3006_s18, 4  ;;  %s3359_s3 = sld [smem:[#allocation25_spill]]  ;;  %s276_s19 = int_to_ptr.vmem [resolvable:$true] %s275_s19 }
  0x13   : > { %p3096_p3 = pnand %p1987_p0, %p262_p2  ;;  %s3361_s2 = sld [smem:[#allocation24_spill]] }
  0x14   : > { %s3007_s27 = smov [#allocation8]   ;;  %s3351_s29 = smov 128  }
  0x15   : > { %s273_s15 = sshll.u32 %s3357_s1, 4  ;;  %p2610_p4 = pneg %p3096_p3  ;;  %s274_s15 = int_to_ptr.hbm [resolvable:$true] %s273_s15 }
  0x16   : > { %s304_s28 = sshll.u32 %s3007_s27, 4  ;;  %s3352_s13 = smov 8   ;;  %s305_s28 = int_to_ptr.vmem [resolvable:$true] %s304_s28 }
  0x17   : > { %p3108_p6 = pnand %p2610_p4, %p53_p1  ;;  %s3010_s14 = smov [#allocation7]  }
  0x18   : > { %s302_s22 = sshll.u32 %s3359_s3, 4  ;;  %s289_s18 = sshll.u32 %s3010_s14, 4  ;;  %s303_s22 = int_to_ptr.hbm [resolvable:$true] %s302_s22  ;;  %s290_s18 = int_to_ptr.vmem [resolvable:$true] %s289_s18 }
  0x19   : > { %s287_s26 = sshll.u32 %s3361_s2, 4  ;;  %s313_s24 = sshll.u32 %s3345_s4, 4  ;;  %s288_s26 = int_to_ptr.hbm [resolvable:$true] %s287_s26  ;;  %s314_s24 = int_to_ptr.hbm [resolvable:$true] %s313_s24 }
  0x1a   : > { %2613 = dma.hbm_to_vmem [thread:$0]  (!%p3108_p6), %s274_s15, 256, %s276_s19, [#allocation6], %s3351_s29, %s3351_s29, %s3352_s13  }
  0x1b   : > { %2619 = dma.hbm_to_vmem [thread:$0]  (!%p3108_p6), %s303_s22, 16, %s305_s28, [#allocation9]  }
  0x1c   : > { %s3011_s25 = smov 64   ;;  %s3012_s27 = smov 4  }
  0x1d   : > { %2616 = dma.hbm_to_vmem [thread:$0]  (!%p3108_p6), %s288_s26, 1024, %s290_s18, [#allocation6], %s3011_s25, %s3011_s25, %s3012_s27  }
  0x1e   : > { %s3013_s15 = smov [#allocation10]   ;;  %s330_s14 = sshll.u32 %s3347_s6, 4  ;;  %s331_s14 = int_to_ptr.hbm [resolvable:$true] %s330_s14 }
  0x1f   : > { %s315_s19 = sshll.u32 %s3013_s15, 4  ;;  %s3014_s26 = smov [#allocation11]   ;;  %s316_s19 = int_to_ptr.vmem [resolvable:$true] %s315_s19 }
  0x20   : > { %2622 = dma.hbm_to_vmem [thread:$0]  (!%p3108_p6), %s314_s24, 12288, %s316_s19, [#allocation9], %s3011_s25, %s3011_s25, %s3012_s27  }
  0x21   : > { %s332_s18 = sshll.u32 %s3014_s26, 4  ;;  %s1986_s20 = sadd.s32 4294967294, %s3004_s12   ;;  %s333_s18 = int_to_ptr.vmem [resolvable:$true] %s332_s18 }
  0x22   : > { %2625 = dma.hbm_to_vmem [thread:$0]  (!%p3108_p6), %s331_s14, 1024, %s333_s18, [#allocation12], %s3011_s25, %s3011_s25, %s3012_s27  }
  0x23   : > { %s3136_s21 = sadd.s32 1, %s3004_s12   ;;  %s39_s15 = sadd.s32 1, %s3000_s11 }
  0x24   : > { %s36_s22 = ssub.s32 %s3004_s12, %s3136_s21  ;;  %p46_p7 = scmp.ne.s32.totalorder %s3000_s11, %s2996_s10 }
  0x25   : > { %p37_p8 = scmp.eq.s32.totalorder %s36_s22, 0  ;;  %p47_p9 = scmp.eq.s32.totalorder %s3004_s12, 0 }
  0x26   : > { %p52_p10 = scmp.ne.s32.totalorder %s2996_s10, %s2992_s30  ;;  %p223_p11 = scmp.eq.s32.totalorder %s3091_s16, 1 }
  0x27   : > { %s3148_s24 = scalar_select %p37_p8, %s3000_s11, %s39_s15  }
  0x28   : > { %p3152_p12 = por %p53_p1, %p52_p10  ;;  %p3156_p13 = por %p223_p11, %p46_p7 }
  0x29   : > { %p229_p0 = scmp.eq.s32.totalorder %s1986_s20, 1  ;;  %p48_p2 = por %p47_p9, %p46_p7 }
  0x2a   : > { %s349_s27 = sand.u32 1, %s3000_s11   ;;  %p2642_p6 = scmp.lt.s32.totalorder %s3004_s12, 2 }
  0x2b   : > { %p3161_p4 = por %p229_p0, %p52_p10  ;;  %s1994_s28 = sshll.u32 %s349_s27, 4 }
  0x2c   : > { %s2469_s14 = sshll.u32 %s3004_s12, 4  ;;  %s3365_s0 = sld [smem:[#allocation22_spill]] }
  0x2d   : > { %s353_s29 = scalar_lea.vmem [#allocation2], %s1994_s28  ;;  %p3170_p8 = pnand %p2642_p6, %p48_p2 }
  0x2e   : > { %s361_s13 = sshll.u32 %s353_s29, 4  ;;  %s350_s1 = scalar_lea.sflag [#allocation3], %s349_s27  ;;  %s362_s13 = int_to_ptr.vmem [resolvable:$true] %s361_s13 }
  0x2f   : > { %p2868_p9 = pneg %p3170_p8 }
  0x32   : > { %s358_s15 = scalar_lea.hbm %s3365_s0, %s2469_s14  ;;  %s2871_s29 = scalar_lea.hbm %s3365_s0, 32 }
  0x33   : > { %s359_s22 = sshll.u32 %s358_s15, 4  ;;  %s360_s22 = int_to_ptr.hbm [resolvable:$true] %s359_s22 }
  0x34   : > { %s2864_s2 = sshra.s32 %s360_s22, 4  ;;  %s2865_s2 = int_to_ptr.hbm [resolvable:$true] %s2864_s2 }
  0x35   : > { %s2866_s3 = scalar_lea.hbm %s2865_s2, 16  ;;  %p2872_p0 = scmp.lt.s32.totalorder %s2865_s2, %s3365_s0 }
  0x36   : > { %p2867_p7 = scmp.ne.s32.totalorder %s2865_s2, %s2866_s3  ;;  %p2873_p2 = scmp.lt.s32.totalorder %s2871_s29, %s2866_s3 }
  0x38   : > { %p2869_p10 = pnand %p2868_p9, %p2867_p7  ;;  %p2874_p6 = por %p2873_p2, %p2872_p0 }
  0x3a   : > { %p2870_p11 = pneg %p2869_p10 }
  0x3c   : > { %p2875_p5 = pnand %p2874_p6, %p2870_p11 }
  0x3e   : > { %2878 = shalt.err (!%p2875_p5)
}
  0x3f   : > { %s3367_s27 = smov 8   ;;  %s3368_s15 = smov 128  }
  0x40   : > { %2629 = dma.hbm_to_vmem [thread:$0]  (!%p3170_p8), %s360_s22, 256, %s362_s13, %s350_s1, %s3368_s15, %s3368_s15, %s3367_s27  }
  0x41   : > { %373 = sbr.rel (%p3096_p3) target bundleno = 803 (0x323), region = 52  ;;  %s3190_s14 = sand.u32 (!%p3096_p3), 1, %s2996_s10  }
  0x42   : > { %s3193_s2 = sshll.u32 (!%p3096_p3), %s3190_s14, 4  ;;  %s376_s3 = scalar_lea.sflag (!%p3096_p3), [#allocation3], %s3190_s14 }
  0x43   : > { %s379_s26 = scalar_lea.vmem (!%p3096_p3), [#allocation2], %s3193_s2 }
  0x46   : > { %2967 = dma.done.wait (%p3152_p12), %s376_s3, 256  }
  0x47   : > { %2969 = vsyncadd (%p3152_p12), %s376_s3, 4294967040 }
  0x48   : > { %2971 = dma.done.wait (%p53_p1), [#allocation6], 1280  }
  0x49   : > { %2973 = vsyncadd (%p53_p1), [#allocation6], 4294966016 }
  0x4a   : > { %2975 = dma.done.wait (%p53_p1), [#allocation9], 12304  }
  0x4b   : > { %2977 = vsyncadd (%p53_p1), [#allocation9], 4294954992 }
  0x4c   : > { %2979 = dma.done.wait (%p53_p1), [#allocation12], 1024  }
  0x4d   : > { %2981 = vsyncadd (%p53_p1), [#allocation12], 4294966272  ;;  %v2477_v0 = vld [vmem:[#allocation7 + $0x38] sm:$0xff]  ;;  %v2476_v1 = vld [vmem:[#allocation7 + $0x30] sm:$0xff]  ;;  %vm628_vm0 = vcmask 1040384   ;;  %vm796_vm1 = vcmask 1046528  }
  0x4e   : > { %529 = vmatpush.bf16.msra.mxu0 %v2477_v0  ;;  %v2485_v2 = vld [vmem:[#allocation10 + $0x38] sm:$0xff]  ;;  %v2475_v4 = vld [vmem:[#allocation7 + $0x28] sm:$0xff]  ;;  %v2484_v5 = vld [vmem:[#allocation10 + $0x30] sm:$0xff]  ;;  %s2582_s15 = sshll.u32 %s3091_s16, 4  ;;  %s437_s17 = scalar_lea.vmem [#allocation13], %s3193_s2 }
  0x4f   : > { %v2493_v3 = vld [vmem:[#allocation10 + $0x78] sm:$0xff]  ;;  %610 = vmatpush.bf16.msra.mxu1 %v2485_v2  ;;  %v2492_v7 = vld [vmem:[#allocation10 + $0x70] sm:$0xff]  ;;  %v2483_v10 = vld [vmem:[#allocation10 + $0x28] sm:$0xff]  ;;  %s1811_s1 = scalar_lea.hbm %s3349_s8, %s2582_s15  ;;  %s1812_s13 = sshll.u32 %s437_s17, 4  ;;  %s1813_s13 = int_to_ptr.vmem [resolvable:$true] %s1812_s13 }
  0x50   : > { %v2501_v6 = vld [vmem:[#allocation10 + $0xb8] sm:$0xff]  ;;  %699 = vmatpush.bf16.msra.mxu2 %v2493_v3  ;;  %v2500_v8 = vld [vmem:[#allocation10 + $0xb0] sm:$0xff]  ;;  %v2491_v11 = vld [vmem:[#allocation10 + $0x68] sm:$0xff]  ;;  %s1814_s23 = sshll.u32 %s1811_s1, 4  ;;  %s3289_s22 = scalar_lea.vmem [#allocation14], %s3193_s2  ;;  %s1815_s23 = int_to_ptr.hbm [resolvable:$true] %s1814_s23 }
  0x51   : > { %780 = vmatpush.bf16.msra.mxu3 %v2501_v6  ;;  %v2474_v9 = vld [vmem:[#allocation7 + $0x20] sm:$0xff]  ;;  %v2499_v12 = vld [vmem:[#allocation10 + $0xa8] sm:$0xff]  ;;  %v2473_v13 = vld [vmem:[#allocation7 + $0x18] sm:$0xff]  ;;  %s1829_s20 = sshll.u32 %s3289_s22, 4  ;;  %s1828_s28 = scalar_lea.hbm %s3350_s9, %s2582_s15  ;;  %s3296_s20 = int_to_ptr.vmem [resolvable:$true] %s1829_s20 }
  0x52   : > { %530 = vmatpush.bf16.msra.mxu0 %v2476_v1  ;;  %v2482_v14 = vld [vmem:[#allocation10 + $0x20] sm:$0xff]  ;;  %v2472_v17 = vld [vmem:[#allocation7 + $0x10] sm:$0xff]  ;;  %v2481_v18 = vld [vmem:[#allocation10 + $0x18] sm:$0xff]  ;;  %s1831_s18 = sshll.u32 %s1828_s28, 4  ;;  %s1795_s2 = scalar_lea.sflag [#allocation4], %s3190_s14  ;;  %s1832_s18 = int_to_ptr.hbm [resolvable:$true] %s1831_s18 }
  0x53   : > { %611 = vmatpush.bf16.msra.mxu1 %v2484_v5  ;;  %v2490_v15 = vld [vmem:[#allocation10 + $0x60] sm:$0xff]  ;;  %v2489_v19 = vld [vmem:[#allocation10 + $0x58] sm:$0xff]  ;;  %v456_v23 = vld [vmem:[#allocation5] sm:$0xff]  ;;  %s2908_s27 = sshra.s32 %s1815_s23, 4  ;;  %s2914_s15 = scalar_lea.hbm %s3349_s8, 32  ;;  %s2909_s27 = int_to_ptr.hbm [resolvable:$true] %s2908_s27 }
  0x54   : > { %700 = vmatpush.bf16.msra.mxu2 %v2492_v7  ;;  %v2498_v16 = vld [vmem:[#allocation10 + $0xa0] sm:$0xff]  ;;  %v457_v24 = vld [vmem:[#allocation5 + $0x8] sm:$0xff]  ;;  %v2479_v30 = vld [vmem:[#allocation10 + $0x8] sm:$0xff]  ;;  %s2910_s3 = scalar_lea.hbm %s2909_s27, 16  ;;  %p2915_p12 = scmp.lt.s32.totalorder %s2909_s27, %s3349_s8 }
  0x55   : > { %781 = vmatpush.bf16.msra.mxu3 %v2500_v8  ;;  %v2471_v20 = vld [vmem:[#allocation7 + $0x8] sm:$0xff]  ;;  %v454_v21 = vld [vmem:[%s379_s26] sm:$0xff]  ;;  %p2911_p1 = scmp.ne.s32.totalorder %s2909_s27, %s2910_s3  ;;  %p2916_p8 = scmp.lt.s32.totalorder %s2914_s15, %s2910_s3 }
  0x56   : > { %531 = vmatpush.bf16.msra.mxu0 %v2475_v4  ;;  %v455_v22 = vld [vmem:[%s379_s26 + $0x8] sm:$0xff]  ;;  %v3217_v27 = vadd.f32 %v456_v23, %v454_v21  ;;  %v2470_v29 = vld [vmem:[#allocation7] sm:$0xff] }
  0x57   : > { %612 = vmatpush.bf16.msra.mxu1 %v2483_v10  ;;  %v2480_v25 = vld [vmem:[#allocation10 + $0x10] sm:$0xff]  ;;  %v3219_v28 = vadd.f32 %v457_v24, %v455_v22  ;;  %v2509_v31 = vld [vmem:[#allocation10 + $0xf8] sm:$0xff]  ;;  %v2487_v32 = vld [vmem:[#allocation10 + $0x48] sm:$0xff]  ;;  %p2912_p3 = pnand %p2911_p1, %p3156_p13  ;;  %p2917_p7 = por %p2916_p8, %p2915_p12 }
  0x58   : > { %701 = vmatpush.bf16.msra.mxu2 %v2491_v11  ;;  %v2488_v26 = vld [vmem:[#allocation10 + $0x50] sm:$0xff]  ;;  %v2478_v34 = vld [vmem:[#allocation10] sm:$0xff]  ;;  %v2507_v37 = vld [vmem:[#allocation10 + $0xe8] sm:$0xff] }
  0x59   : > { %782 = vmatpush.bf16.msra.mxu3 %v2499_v12  ;;  %v460_v33 = vpack.c.bf16 %v3219_v28, %v3217_v27  ;;  %v2508_v35 = vld [vmem:[#allocation10 + $0xf0] sm:$0xff]  ;;  %v2486_v36 = vld [vmem:[#allocation10 + $0x40] sm:$0xff]  ;;  %v2497_v39 = vld [vmem:[#allocation10 + $0x98] sm:$0xff]  ;;  %p2913_p5 = pneg %p2912_p3 }
  0x5a   : > { %532 = vmatpush.bf16.msra.mxu0 %v2474_v9  ;;  %v2506_v38 = vld [vmem:[#allocation10 + $0xe0] sm:$0xff]  ;;  %v2505_v40 = vld [vmem:[#allocation10 + $0xd8] sm:$0xff]  ;;  %v2496_v43 = vld [vmem:[#allocation10 + $0x90] sm:$0xff] }
  0x5b   : > { %613 = vmatpush.bf16.msra.mxu1 %v2482_v14  ;;  %v2517_v41 = vld [vmem:[#allocation10 + $0x138] sm:$0xff]  ;;  %v2504_v44 = vld [vmem:[#allocation10 + $0xd0] sm:$0xff]  ;;  %v2495_v47 = vld [vmem:[#allocation10 + $0x88] sm:$0xff]  ;;  %p2918_p9 = pnand %p2917_p7, %p2913_p5 }
  0x5c   : > { %702 = vmatpush.bf16.msra.mxu2 %v2490_v15  ;;  %v2525_v42 = vld [vmem:[#allocation10 + $0x178] sm:$0xff]  ;;  %v2516_v45 = vld [vmem:[#allocation10 + $0x130] sm:$0xff]  ;;  %v2503_v48 = vld [vmem:[#allocation10 + $0xc8] sm:$0xff] }
  0x5d   : > { %783 = vmatpush.bf16.msra.mxu3 %v2498_v16  ;;  %v2524_v46 = vld [vmem:[#allocation10 + $0x170] sm:$0xff]  ;;  %v2515_v49 = vld [vmem:[#allocation10 + $0x128] sm:$0xff]  ;;  %v2494_v51 = vld [vmem:[#allocation10 + $0x80] sm:$0xff] }
  0x5e   : > { %533 = vmatpush.bf16.msra.mxu0 %v2473_v13  ;;  %v2523_v50 = vld [vmem:[#allocation10 + $0x168] sm:$0xff]  ;;  %v2502_v52 = vld [vmem:[#allocation10 + $0xc0] sm:$0xff]  ;;  %v2513_v55 = vld [vmem:[#allocation10 + $0x118] sm:$0xff] }
  0x5f   : > { %614 = vmatpush.bf16.msra.mxu1 %v2481_v18  ;;  %v2514_v53 = vld [vmem:[#allocation10 + $0x120] sm:$0xff]  ;;  %v2521_v56 = vld [vmem:[#allocation10 + $0x158] sm:$0xff]  ;;  %v2512_v57 = vld [vmem:[#allocation10 + $0x110] sm:$0xff] }
  0x60   : > { %703 = vmatpush.bf16.msra.mxu2 %v2489_v19  ;;  %v2522_v54 = vld [vmem:[#allocation10 + $0x160] sm:$0xff]  ;;  %v2520_v58 = vld [vmem:[#allocation10 + $0x150] sm:$0xff]  ;;  %v2511_v59 = vld [vmem:[#allocation10 + $0x108] sm:$0xff] }
  0x61   : > { %784 = vmatpush.bf16.msra.mxu3 %v2497_v39  ;;  %v2519_v60 = vld [vmem:[#allocation10 + $0x148] sm:$0xff]  ;;  %v2510_v61 = vld [vmem:[#allocation10 + $0x100] sm:$0xff]  ;;  %v2692_v0 = vld [vmem:[#allocation8] ss:$0 sm:$0xff] }
  0x62   : > { %534 = vmatpush.bf16.msra.mxu0 %v2472_v17  ;;  %v2518_v62 = vld [vmem:[#allocation10 + $0x140] sm:$0xff]  ;;  %v2533_v6 = vld [vmem:[#allocation10 + $0x1b8] sm:$0xff]  ;;  %v2532_v9 = vld [vmem:[#allocation10 + $0x1b0] sm:$0xff] }
  0x63   : > { %615 = vmatpush.bf16.msra.mxu1 %v2480_v25  ;;  %v2541_v7 = vld [vmem:[#allocation10 + $0x1f8] sm:$0xff]  ;;  %v2540_v10 = vld [vmem:[#allocation10 + $0x1f0] sm:$0xff]  ;;  %v2531_v12 = vld [vmem:[#allocation10 + $0x1a8] sm:$0xff] }
  0x64   : > { %704 = vmatpush.bf16.msra.mxu2 %v2488_v26  ;;  %v2539_v13 = vld [vmem:[#allocation10 + $0x1e8] sm:$0xff]  ;;  %v2530_v15 = vld [vmem:[#allocation10 + $0x1a0] sm:$0xff]  ;;  %v2549_v17 = vld [vmem:[#allocation10 + $0x238] sm:$0xff] }
  0x65   : > { %785 = vmatpush.bf16.msra.mxu3 %v2496_v43  ;;  %v2538_v16 = vld [vmem:[#allocation10 + $0x1e0] sm:$0xff]  ;;  %v2557_v18 = vld [vmem:[#allocation10 + $0x278] sm:$0xff]  ;;  %v2548_v23 = vld [vmem:[#allocation10 + $0x230] sm:$0xff] }
  0x66   : > { %535 = vmatpush.bf16.msra.mxu0 %v2471_v20  ;;  %v2529_v21 = vld [vmem:[#allocation10 + $0x198] sm:$0xff]  ;;  %v2556_v24 = vld [vmem:[#allocation10 + $0x270] sm:$0xff]  ;;  %v2526_v39 = vld [vmem:[#allocation10 + $0x180] sm:$0xff] }
  0x67   : > { %616 = vmatpush.bf16.msra.mxu1 %v2479_v30  ;;  %v2537_v22 = vld [vmem:[#allocation10 + $0x1d8] sm:$0xff]  ;;  %v2528_v26 = vld [vmem:[#allocation10 + $0x190] sm:$0xff]  ;;  %v2547_v30 = vld [vmem:[#allocation10 + $0x228] sm:$0xff] }
  0x68   : > { %705 = vmatpush.bf16.msra.mxu2 %v2487_v32  ;;  %v2565_v43 = vld [vmem:[#allocation10 + $0x2b8] sm:$0xff] }
  0x69   : > { %786 = vmatpush.bf16.msra.mxu3 %v2495_v47 }
  0x6a   : > { %536 = vmatpush.bf16.msra.mxu0 %v2470_v29  ;;  %v2536_v29 = vld [vmem:[#allocation10 + $0x1d0] sm:$0xff] }
  0x6b   : > { %617 = vmatpush.bf16.msra.mxu1 %v2478_v34  ;;  %v2535_v34 = vld [vmem:[#allocation10 + $0x1c8] sm:$0xff] }
  0x6c   : > { %706 = vmatpush.bf16.msra.mxu2 %v2486_v36  ;;  %v2546_v36 = vld [vmem:[#allocation10 + $0x220] sm:$0xff] }
  0x6d   : > { %537 = vmatmul.bf16.vlgmr.msra.gmra.mxu0 %v460_v33  ;;  %787 = vmatpush.bf16.msra.mxu3 %v2494_v51  ;;  %v2527_v33 = vld [vmem:[#allocation10 + $0x188] sm:$0xff] }
  0x6e   : > { %877 = vmatpush.bf16.msrb.mxu0 %v2509_v31  ;;  %v2555_v31 = vld [vmem:[#allocation10 + $0x268] sm:$0xff] }
  0x6f   : > { %965 = vmatpush.bf16.msrb.mxu1 %v2517_v41  ;;  %v2545_v41 = vld [vmem:[#allocation10 + $0x218] sm:$0xff] }
  0x70   : > { %1046 = vmatpush.bf16.msrb.mxu2 %v2525_v42  ;;  %v2553_v42 = vld [vmem:[#allocation10 + $0x258] sm:$0xff] }
  0x71   : > { %1190 = vmatpush.bf16.msrb.mxu3 %v2533_v6 }
  0x72   : > { %878 = vmatpush.bf16.msrb.mxu0 %v2508_v35 }
  0x73   : > { %966 = vmatpush.bf16.msrb.mxu1 %v2516_v45 }
  0x74   : > { %1047 = vmatpush.bf16.msrb.mxu2 %v2524_v46  ;;  %v2573_v46 = vld [vmem:[#allocation10 + $0x2f8] sm:$0xff] }
  0x75   : > { %1191 = vmatpush.bf16.msrb.mxu3 %v2532_v9 }
  0x76   : > { %879 = vmatpush.bf16.msrb.mxu0 %v2507_v37  ;;  %v2554_v37 = vld [vmem:[#allocation10 + $0x260] sm:$0xff] }
  0x77   : > { %967 = vmatpush.bf16.msrb.mxu1 %v2515_v49 }
  0x78   : > { %1048 = vmatpush.bf16.msrb.mxu2 %v2523_v50 }
  0x79   : > { %1192 = vmatpush.bf16.msrb.mxu3 %v2531_v12  ;;  %v2550_v12 = vld [vmem:[#allocation10 + $0x240] sm:$0xff] }
  0x7a   : > { %880 = vmatpush.bf16.msrb.mxu0 %v2506_v38 }
  0x7b   : > { %968 = vmatpush.bf16.msrb.mxu1 %v2514_v53  ;;  %v2552_v53 = vld [vmem:[#allocation10 + $0x250] sm:$0xff] }
  0x7c   : > { %1049 = vmatpush.bf16.msrb.mxu2 %v2522_v54  ;;  %v2564_v54 = vld [vmem:[#allocation10 + $0x2b0] sm:$0xff] }
  0x7d   : > { %1193 = vmatpush.bf16.msrb.mxu3 %v2530_v15  ;;  %v2562_v15 = vld [vmem:[#allocation10 + $0x2a0] sm:$0xff] }
  0x7e   : > { %881 = vmatpush.bf16.msrb.mxu0 %v2505_v40  ;;  %v2534_v40 = vld [vmem:[#allocation10 + $0x1c0] sm:$0xff] }
  0x7f   : > { %969 = vmatpush.bf16.msrb.mxu1 %v2513_v55 }
  0x80   : > { %1050 = vmatpush.bf16.msrb.mxu2 %v2521_v56 }
  0x81   : > { %1194 = vmatpush.bf16.msrb.mxu3 %v2529_v21 }
  0x82   : > { %882 = vmatpush.bf16.msrb.mxu0 %v2504_v44 }
  0x83   : > { %970 = vmatpush.bf16.msrb.mxu1 %v2512_v57  ;;  %v2694_v57 = vld [vmem:[%s3346_s5 + $0x1] ss:$0 sm:$0xff] }
  0x84   : > { %1051 = vmatpush.bf16.msrb.mxu2 %v2520_v58  ;;  %v2572_v58 = vld [vmem:[#allocation10 + $0x2f0] sm:$0xff] }
  0x85   : > { %1195 = vmatpush.bf16.msrb.mxu3 %v2528_v26 }
  0x86   : > { %883 = vmatpush.bf16.msrb.mxu0 %v2503_v48 }
  0x87   : > { %971 = vmatpush.bf16.msrb.mxu1 %v2511_v59 }
  0x88   : > { %1052 = vmatpush.bf16.msrb.mxu2 %v2519_v60 }
  0x89   : > { %1196 = vmatpush.bf16.msrb.mxu3 %v2527_v33 }
  0x8a   : > { %884 = vmatpush.bf16.msrb.mxu0 %v2502_v52  ;;  %v2544_v52 = vld [vmem:[#allocation10 + $0x210] sm:$0xff] }
  0x8b   : > { %972 = vmatpush.bf16.msrb.mxu1 %v2510_v61 }
  0x8c   : > { %1053 = vmatpush.bf16.msrb.mxu2 %v2518_v62 }
  0x8d   : > { %1197 = vmatpush.bf16.msrb.mxu3 %v2526_v39 }
  0x8e   : > { %1278 = vmatpush.bf16.msra.mxu0 %v2541_v7 }
  0x92   : > { %1279 = vmatpush.bf16.msra.mxu0 %v2540_v10  ;;  %v2542_v10 = vld [vmem:[#allocation10 + $0x200] sm:$0xff] }
  0x96   : > { %1280 = vmatpush.bf16.msra.mxu0 %v2539_v13 }
  0x9a   : > { %1281 = vmatpush.bf16.msra.mxu0 %v2538_v16  ;;  %v2570_v16 = vld [vmem:[#allocation10 + $0x2e0] sm:$0xff] }
  0x9e   : > { %1282 = vmatpush.bf16.msra.mxu0 %v2537_v22 }
  0xa2   : > { %1283 = vmatpush.bf16.msra.mxu0 %v2536_v29 }
  0xa6   : > { %1284 = vmatpush.bf16.msra.mxu0 %v2535_v34 }
  0xaa   : > { %1285 = vmatpush.bf16.msra.mxu0 %v2534_v40 }
  0xea   : > { %v538_v63 = vpop.f32.mrf.mxu0 }
  0xeb   : > { %v3223_v3 = vadd.f32 %v2692_v0, %v538_v63  ;;  %v2543_v63 = vld [vmem:[#allocation10 + $0x208] sm:$0xff] }
  0xf2   : > { %v540_v1 = vpop.f32.mrf.mxu0 }
  0xf3   : > { %v541_v2 = vadd.f32 %v2692_v0, %v540_v1  ;;  %v2551_v0 = vld [vmem:[#allocation10 + $0x248] sm:$0xff] }
  0xf4   : > { %v2563_v1 = vld [vmem:[#allocation10 + $0x2a8] sm:$0xff] }
  0xf5   : > { %v3225_v4 = vmul.f32 0.0, %v541_v2  ;;  %v2571_v2 = vld [vmem:[#allocation10 + $0x2e8] sm:$0xff] }
  0xf7   : > { %v545_v5 = vpack.c.bf16 %v3225_v4, %v3223_v3 }
  0xf9   : > { %618 = vmatmul.bf16.vlgmr.msra.gmra.mxu1 %v545_v5  ;;  %707 = vmatmul.bf16.vlgmr.msra.gmra.mxu2 %v545_v5 }
  0xfa   : > { %788 = vmatmul.bf16.vlgmr.msra.gmra.mxu3 %v545_v5  ;;  %885 = vmatmul.bf16.vlgmr.msrb.gmra.mxu0 %v545_v5 }
  0xfb   : > { %1359 = vmatpush.bf16.msra.mxu1 %v2549_v17  ;;  %1456 = vmatpush.bf16.msra.mxu2 %v2557_v18  ;;  %v2561_v17 = vld [vmem:[#allocation10 + $0x298] sm:$0xff] }
  0xfc   : > { %1544 = vmatpush.bf16.msra.mxu3 %v2565_v43  ;;  %1625 = vmatpush.bf16.msrb.mxu0 %v2573_v46  ;;  %v2569_v18 = vld [vmem:[#allocation10 + $0x2d8] sm:$0xff] }
  0xff   : > { %1360 = vmatpush.bf16.msra.mxu1 %v2548_v23  ;;  %1457 = vmatpush.bf16.msra.mxu2 %v2556_v24  ;;  %v2560_v23 = vld [vmem:[#allocation10 + $0x290] sm:$0xff] }
 0x100   : > { %1545 = vmatpush.bf16.msra.mxu3 %v2564_v54  ;;  %1626 = vmatpush.bf16.msrb.mxu0 %v2572_v58  ;;  %v2568_v24 = vld [vmem:[#allocation10 + $0x2d0] sm:$0xff] }
 0x103   : > { %1361 = vmatpush.bf16.msra.mxu1 %v2547_v30  ;;  %1458 = vmatpush.bf16.msra.mxu2 %v2555_v31  ;;  %v2559_v30 = vld [vmem:[#allocation10 + $0x288] sm:$0xff] }
 0x104   : > { %1546 = vmatpush.bf16.msra.mxu3 %v2563_v1  ;;  %1627 = vmatpush.bf16.msrb.mxu0 %v2571_v2  ;;  %v2567_v31 = vld [vmem:[#allocation10 + $0x2c8] sm:$0xff] }
 0x107   : > { %1362 = vmatpush.bf16.msra.mxu1 %v2546_v36  ;;  %1459 = vmatpush.bf16.msra.mxu2 %v2554_v37  ;;  %v2558_v37 = vld [vmem:[#allocation10 + $0x280] sm:$0xff] }
 0x108   : > { %1547 = vmatpush.bf16.msra.mxu3 %v2562_v15  ;;  %1628 = vmatpush.bf16.msrb.mxu0 %v2570_v16  ;;  %v2581_v16 = vld [vmem:[#allocation11 + $0x38] sm:$0xff] }
 0x109   : > { %973 = vmatmul.bf16.vlgmr.msrb.gmra.mxu1 %v545_v5  ;;  %1054 = vmatmul.bf16.vlgmr.msrb.gmra.mxu2 %v545_v5 }
 0x10b   : > { %1363 = vmatpush.bf16.msra.mxu1 %v2545_v41  ;;  %1460 = vmatpush.bf16.msra.mxu2 %v2553_v42 }
 0x10c   : > { %1548 = vmatpush.bf16.msra.mxu3 %v2561_v17  ;;  %1629 = vmatpush.bf16.msrb.mxu0 %v2569_v18  ;;  %v2580_v17 = vld [vmem:[#allocation11 + $0x30] sm:$0xff] }
 0x10f   : > { %1364 = vmatpush.bf16.msra.mxu1 %v2544_v52  ;;  %1461 = vmatpush.bf16.msra.mxu2 %v2552_v53 }
 0x110   : > { %1549 = vmatpush.bf16.msra.mxu3 %v2560_v23  ;;  %1630 = vmatpush.bf16.msrb.mxu0 %v2568_v24 }
 0x113   : > { %1365 = vmatpush.bf16.msra.mxu1 %v2543_v63  ;;  %1462 = vmatpush.bf16.msra.mxu2 %v2551_v0 }
 0x114   : > { %1550 = vmatpush.bf16.msra.mxu3 %v2559_v30  ;;  %1631 = vmatpush.bf16.msrb.mxu0 %v2567_v31 }
 0x117   : > { %1366 = vmatpush.bf16.msra.mxu1 %v2542_v10  ;;  %1463 = vmatpush.bf16.msra.mxu2 %v2550_v12 }
 0x118   : > { %1551 = vmatpush.bf16.msra.mxu3 %v2558_v37  ;;  %v2576_v37 = vld [vmem:[#allocation11 + $0x10] sm:$0xff] }
 0x11b   : > { %1772 = vmatpush.bf16.msrb.mxu1 %v2581_v16 }
 0x11f   : > { %1773 = vmatpush.bf16.msrb.mxu1 %v2580_v17 }
 0x176   : > { %v3229_v8 = vpop.f32.mrf.mxu1 }
 0x177   : > { %v886_v19 = vpop.f32.mrf.mxu0 }
 0x178   : > { %v895_v44 = vrot.slane %v886_v19, 7 }
 0x17c   : > { %v3231_v11 = vpop.f32.mrf.mxu2 }
 0x17d   : > { %v789_v13 = vpop.f32.mrf.mxu3 }
 0x17e   : > { %v3233_v14 = vpop.f32.mrf.mxu1  ;;  %v797_v34 = vrot.slane %v789_v13, 1 }
 0x17f   : > { %v888_v35 = vpop.f32.mrf.mxu0  ;;  %v625_v29 = vrot.slane %v3233_v14, 7 }
 0x180   : > { %v892_v38 = vrot.slane %v888_v35, 7 }
 0x182   : > { %v899_v48 = vsel %vm628_vm0, %v892_v38, %v895_v44  ;;  %v896_v50 = vsel %vm628_vm0, %v895_v44, %v892_v38  ;;  %v2566_v38 = vld [vmem:[#allocation10 + $0x2c0] sm:$0xff] }
 0x183   : > { %1632 = vmatpush.bf16.msrb.mxu0 %v2566_v38 }
 0x184   : > { %v3235_v20 = vpop.f32.mrf.mxu2 }
 0x185   : > { %v791_v26 = vpop.f32.mrf.mxu3 }
 0x186   : > { %v974_v25 = vpop.f32.mrf.mxu1  ;;  %v798_v33 = vrot.slane %v791_v26, 1 }
 0x187   : > { %v979_v55 = vadd.f32 %v974_v25, %v899_v48 }
 0x188   : > { %v799_v14 = vsel %vm796_vm1, %v797_v34, %v798_v33  ;;  %v803_v44 = vsel %vm796_vm1, %v798_v33, %v797_v34  ;;  %v2696_v34 = vld [vmem:[%s3346_s5 + $0x3] ss:$0 sm:$0xff] }
 0x18c   : > { %v1055_v32 = vpop.f32.mrf.mxu2 }
 0x18d   : > { %v1062_v49 = vrot.slane %v1055_v32, 1  ;;  %v629_v32 = vrot.slane %v3229_v8, 7 }
 0x18e   : > { %v976_v45 = vpop.f32.mrf.mxu1 }
 0x18f   : > { %v980_v56 = vadd.f32 %v976_v45, %v896_v50  ;;  %v633_v35 = vsel %vm628_vm0, %v625_v29, %v629_v32  ;;  %v630_v40 = vsel %vm628_vm0, %v629_v32, %v625_v29  ;;  %v2577_v32 = vld [vmem:[#allocation11 + $0x18] sm:$0xff] }
 0x190   : > { %v713_v42 = vadd.f32 %v3231_v11, %v633_v35  ;;  %v714_v43 = vadd.f32 %v3235_v20, %v630_v40 }
 0x192   : > { %v804_v46 = vadd.f32 %v799_v14, %v713_v42  ;;  %v805_v11 = vadd.f32 %v803_v44, %v714_v43 }
 0x194   : > { %v1057_v47 = vpop.f32.mrf.mxu2 }
 0x195   : > { %v1063_v51 = vrot.slane %v1057_v47, 1 }
 0x197   : > { %v1064_v59 = vsel %vm796_vm1, %v1062_v49, %v1063_v51  ;;  %v1068_v60 = vsel %vm796_vm1, %v1063_v51, %v1062_v49  ;;  %v2693_v49 = vld [vmem:[%s3346_s5] ss:$0 sm:$0xff] }
 0x198   : > { %v1069_v61 = vadd.f32 %v1064_v59, %v979_v55  ;;  %v1070_v62 = vadd.f32 %v1068_v60, %v980_v56  ;;  %v811_v60 = vadd.f32 %v2693_v49, %v805_v11 }
 0x19a   : > { %v1076_v5 = vadd.f32 %v2694_v57, %v1069_v61  ;;  %v1077_v6 = vadd.f32 %v2694_v57, %v1070_v62  ;;  %v810_v57 = vadd.f32 %v2693_v49, %v804_v46  ;;  %v2574_v46 = vld [vmem:[#allocation11] sm:$0xff] }
 0x19c   : > { %v2231_v7 = vmul.f32 -1.442695, %v1076_v5  ;;  %v2232_v9 = vmul.f32 -1.442695, %v1077_v6 }
 0x19e   : > { %2698 = vpow2.f32 %v2231_v7 }
 0x19f   : > { %2700 = vpow2.f32 %v2232_v9 }
 0x1a4   : > { %v2699_v19 = vpop.eup %2698 }
 0x1a5   : > { %v2701_v21 = vpop.eup %2700  ;;  %v1084_v22 = vadd.f32 1.0, %v2699_v19 }
 0x1a6   : > { %v1085_v25 = vadd.f32 1.0, %v2701_v21  ;;  %v2579_v21 = vld [vmem:[#allocation11 + $0x28] sm:$0xff] }
 0x1a7   : > { %2702 = vrcp.f32 %v1084_v22  ;;  %v1097_v47 = vand.u32 2147483648, %v1084_v22  ;;  %v1095_v51 = vand.u32 2147483647, %v1084_v22  ;;  %vm1091_vm4 = vweird.f32 %v1084_v22  ;;  %1774 = vmatpush.bf16.msrb.mxu1 %v2579_v21 }
 0x1a8   : > { %2704 = vrcp.f32 %v1085_v25  ;;  %v1112_v52 = vand.u32 2147483648, %v1085_v25  ;;  %v1110_v20 = vand.u32 2147483647, %v1085_v25  ;;  %vm1106_vm6 = vweird.f32 %v1085_v25 }
 0x1a9   : > { %v1098_v55 = vor.u32 1.1754944e-38, %v1097_v47  ;;  %vm1096_vm7 = vcmp.eq.f32.partialorder %v1095_v51, 8.507059e+37 }
 0x1aa   : > { %v1113_v58 = vor.u32 1.1754944e-38, %v1112_v52  ;;  %vm1111_vm9 = vcmp.eq.f32.partialorder %v1110_v20, 8.507059e+37 }
 0x1ad   : > { %v2703_v36 = vpop.eup %2702 }
 0x1ae   : > { %v2705_v39 = vpop.eup %2704  ;;  %v1087_v41 = vmul.f32 %v2703_v36, %v1084_v22  ;;  %vm1092_vm2 = vweird.f32 %v2703_v36 }
 0x1af   : > { %v1102_v8 = vmul.f32 %v2705_v39, %v1085_v25  ;;  %vm1107_vm3 = vweird.f32 %v2705_v39  ;;  %vm1093_vm5 = vmor %vm1091_vm4, %vm1092_vm2  ;;  %v2578_v25 = vld [vmem:[#allocation11 + $0x20] sm:$0xff] }
 0x1b0   : > { %v1088_v45 = vsub.f32 1.0, %v1087_v41  ;;  %vm1108_vm8 = vmor %vm1106_vm6, %vm1107_vm3  ;;  %1775 = vmatpush.bf16.msrb.mxu1 %v2578_v25 }
 0x1b1   : > { %v1103_v48 = vsub.f32 1.0, %v1102_v8  ;;  %v2575_v8 = vld [vmem:[#allocation11 + $0x8] sm:$0xff] }
 0x1b2   : > { %v1089_v50 = vmul.f32 %v2703_v36, %v1088_v45 }
 0x1b3   : > { %v1104_v53 = vmul.f32 %v2705_v39, %v1103_v48 }
 0x1b4   : > { %v1090_v54 = vadd.f32 %v2703_v36, %v1089_v50  ;;  %1776 = vmatpush.bf16.msrb.mxu1 %v2577_v32 }
 0x1b5   : > { %v1105_v56 = vadd.f32 %v2705_v39, %v1104_v53 }
 0x1b6   : > { %v1094_v59 = vsel %vm1093_vm5, %v2703_v36, %v1090_v54 }
 0x1b7   : > { %v1099_v61 = vsel %vm1096_vm7, %v1098_v55, %v1094_v59  ;;  %v1109_v62 = vsel %vm1108_vm8, %v2705_v39, %v1105_v56 }
 0x1b8   : > { %v1114_v63 = vsel %vm1111_vm9, %v1113_v58, %v1109_v62  ;;  %v1116_v0 = vmul.f32 %v1099_v61, %v810_v57  ;;  %1777 = vmatpush.bf16.msrb.mxu1 %v2576_v37 }
 0x1b9   : > { %v1117_v1 = vmul.f32 %v1114_v63, %v811_v60 }
 0x1ba   : > { %v1118_v2 = vadd.f32 %v1116_v0, %v3223_v3 }
 0x1bb   : > { %v1119_v5 = vadd.f32 %v1117_v1, %v3225_v4 }
 0x1bc   : > { %v3257_v7 = vmul.f32 0.70710677, %v1118_v2  ;;  %1778 = vmatpush.bf16.msrb.mxu1 %v2575_v8 }
 0x1bd   : > { %v1121_v6 = vmul.f32 0.70710677, %v1119_v5 }
 0x1bf   : > { %v3259_v9 = vmul.f32 0.0, %v1121_v6 }
 0x1c0   : > { %1779 = vmatpush.bf16.msrb.mxu1 %v2574_v46 }
 0x1c1   : > { %v1124_v10 = vpack.c.bf16 %v3259_v9, %v3257_v7 }
 0x1c3   : > { %1198 = vmatmul.bf16.vlgmr.msrb.gmra.mxu3 %v1124_v10  ;;  %1286 = vmatmul.bf16.vlgmr.msra.gmra.mxu0 %v1124_v10 }
 0x1c4   : > { %1367 = vmatmul.bf16.vlgmr.msra.gmra.mxu1 %v1124_v10  ;;  %1464 = vmatmul.bf16.vlgmr.msra.gmra.mxu2 %v1124_v10 }
 0x1d3   : > { %1552 = vmatmul.bf16.vlgmr.msra.gmra.mxu3 %v1124_v10  ;;  %1633 = vmatmul.bf16.vlgmr.msrb.gmra.mxu0 %v1124_v10 }
 0x240   : > { %v1287_v12 = vpop.f32.mrf.mxu0 }
 0x241   : > { %v1368_v47 = vpop.f32.mrf.mxu1 }
 0x242   : > { %v1375_v59 = vrot.slane %v1368_v47, 1 }
 0x246   : > { %v1199_v13 = vpop.f32.mrf.mxu3 }
 0x247   : > { %v1465_v15 = vpop.f32.mrf.mxu2  ;;  %v1208_v11 = vrot.slane %v1199_v13, 7 }
 0x248   : > { %v1289_v3 = vpop.f32.mrf.mxu0  ;;  %v1474_v24 = vrot.slane %v1465_v15, 7  ;;  %v2695_v15 = vld [vmem:[%s3346_s5 + $0x2] ss:$0 sm:$0xff] }
 0x249   : > { %v1370_v20 = vpop.f32.mrf.mxu1 }
 0x24a   : > { %v1376_v57 = vrot.slane %v1370_v20, 1 }
 0x24c   : > { %v1377_v5 = vsel %vm796_vm1, %v1375_v59, %v1376_v57  ;;  %v1381_v10 = vsel %vm796_vm1, %v1376_v57, %v1375_v59 }
 0x24e   : > { %v1201_v4 = vpop.f32.mrf.mxu3 }
 0x24f   : > { %v1467_v19 = vpop.f32.mrf.mxu2  ;;  %v1205_v51 = vrot.slane %v1201_v4, 7 }
 0x250   : > { %v1634_v18 = vpop.f32.mrf.mxu0  ;;  %v1471_v22 = vrot.slane %v1467_v19, 7 }
 0x251   : > { %v1641_v29 = vrot.slane %v1634_v18, 1  ;;  %v1212_v54 = vsel %vm628_vm0, %v1205_v51, %v1208_v11  ;;  %v1209_v56 = vsel %vm628_vm0, %v1208_v11, %v1205_v51 }
 0x252   : > { %v1478_v30 = vsel %vm628_vm0, %v1471_v22, %v1474_v24  ;;  %v1475_v38 = vsel %vm628_vm0, %v1474_v24, %v1471_v22  ;;  %v1292_v60 = vadd.f32 %v1287_v12, %v1212_v54  ;;  %v1293_v62 = vadd.f32 %v1289_v3, %v1209_v56 }
 0x254   : > { %v1382_v13 = vadd.f32 %v1377_v5, %v1292_v60  ;;  %v1383_v12 = vadd.f32 %v1381_v10, %v1293_v62 }
 0x256   : > { %v1553_v23 = vpop.f32.mrf.mxu3  ;;  %v1389_v22 = vadd.f32 %v2695_v15, %v1382_v13  ;;  %v1390_v25 = vadd.f32 %v2695_v15, %v1383_v12 }
 0x257   : > { %v1558_v33 = vadd.f32 %v1553_v23, %v1478_v30 }
 0x258   : > { %v1636_v26 = vpop.f32.mrf.mxu0 }
 0x259   : > { %v1642_v31 = vrot.slane %v1636_v26, 1 }
 0x25b   : > { %v1643_v35 = vsel %vm796_vm1, %v1641_v29, %v1642_v31  ;;  %v1647_v41 = vsel %vm796_vm1, %v1642_v31, %v1641_v29 }
 0x25c   : > { %v1648_v36 = vadd.f32 %v1643_v35, %v1558_v33 }
 0x25e   : > { %v1555_v39 = vpop.f32.mrf.mxu3  ;;  %v1655_v40 = vadd.f32 %v2696_v34, %v1648_v36 }
 0x25f   : > { %v1559_v14 = vadd.f32 %v1555_v39, %v1475_v38  ;;  %v2697_v38 = vld [vmem:[%s3348_s7] ss:$0 sm:$0xff] }
 0x260   : > { %v2427_v42 = vmul.f32 -1.442695, %v1655_v40 }
 0x261   : > { %v1649_v43 = vadd.f32 %v1647_v41, %v1559_v14 }
 0x262   : > { %2706 = vpow2.f32 %v2427_v42 }
 0x263   : > { %v1656_v44 = vadd.f32 %v2696_v34, %v1649_v43 }
 0x265   : > { %v2428_v45 = vmul.f32 -1.442695, %v1656_v44 }
 0x267   : > { %2708 = vpow2.f32 %v2428_v45 }
 0x268   : > { %v2707_v48 = vpop.eup %2706 }
 0x269   : > { %v1663_v49 = vadd.f32 1.0, %v2707_v48 }
 0x26b   : > { %2710 = vrcp.f32 %v1663_v49  ;;  %v1676_v0 = vand.u32 2147483648, %v1663_v49  ;;  %v1674_v2 = vand.u32 2147483647, %v1663_v49  ;;  %vm1670_vm11 = vweird.f32 %v1663_v49 }
 0x26d   : > { %v2709_v50 = vpop.eup %2708  ;;  %v1677_v4 = vor.u32 1.1754944e-38, %v1676_v0  ;;  %vm1675_vm13 = vcmp.eq.f32.partialorder %v1674_v2, 8.507059e+37 }
 0x26e   : > { %v1664_v52 = vadd.f32 1.0, %v2709_v50 }
 0x270   : > { %2712 = vrcp.f32 %v1664_v52  ;;  %v1691_v17 = vand.u32 2147483648, %v1664_v52  ;;  %v1689_v19 = vand.u32 2147483647, %v1664_v52  ;;  %vm1685_vm15 = vweird.f32 %v1664_v52 }
 0x271   : > { %v2711_v53 = vpop.eup %2710 }
 0x272   : > { %v1666_v55 = vmul.f32 %v2711_v53, %v1663_v49  ;;  %vm1671_vm10 = vweird.f32 %v2711_v53  ;;  %v1692_v24 = vor.u32 1.1754944e-38, %v1691_v17  ;;  %vm1690_vm1 = vcmp.eq.f32.partialorder %v1689_v19, 8.507059e+37 }
 0x273   : > { %vm1672_vm12 = vmor %vm1670_vm11, %vm1671_vm10 }
 0x274   : > { %v1667_v58 = vsub.f32 1.0, %v1666_v55 }
 0x276   : > { %v2713_v61 = vpop.eup %2712  ;;  %v1668_v63 = vmul.f32 %v2711_v53, %v1667_v58 }
 0x277   : > { %v1681_v1 = vmul.f32 %v2713_v61, %v1664_v52  ;;  %vm1686_vm14 = vweird.f32 %v2713_v61 }
 0x278   : > { %v1669_v6 = vadd.f32 %v2711_v53, %v1668_v63  ;;  %vm1687_vm0 = vmor %vm1685_vm15, %vm1686_vm14 }
 0x279   : > { %v1682_v16 = vsub.f32 1.0, %v1681_v1 }
 0x27a   : > { %v1673_v3 = vsel %vm1672_vm12, %v2711_v53, %v1669_v6 }
 0x27b   : > { %v1683_v18 = vmul.f32 %v2713_v61, %v1682_v16  ;;  %v1678_v21 = vsel %vm1675_vm13, %v1677_v4, %v1673_v3 }
 0x27c   : > { %v1695_v29 = vmul.f32 %v1678_v21, %v1389_v22 }
 0x27d   : > { %v1684_v23 = vadd.f32 %v2713_v61, %v1683_v18 }
 0x27e   : > { %v1697_v32 = vadd.f32 %v1695_v29, %v3257_v7 }
 0x27f   : > { %v1688_v26 = vsel %vm1687_vm0, %v2713_v61, %v1684_v23 }
 0x280   : > { %v1693_v30 = vsel %vm1690_vm1, %v1692_v24, %v1688_v26  ;;  %v1699_v35 = vmul.f32 0.70710677, %v1697_v32 }
 0x281   : > { %v1696_v31 = vmul.f32 %v1693_v30, %v1390_v25 }
 0x283   : > { %v1698_v33 = vadd.f32 %v1696_v31, %v3259_v9 }
 0x285   : > { %v1700_v34 = vmul.f32 0.70710677, %v1698_v33 }
 0x287   : > { %v1702_v36 = vmul.f32 0.0, %v1700_v34 }
 0x289   : > { %v1703_v37 = vpack.c.bf16 %v1702_v36, %v1699_v35 }
 0x28b   : > { %1780 = vmatmul.bf16.vlgmr.msrb.gmra.mxu1 %v1703_v37 }
 0x308   : > { %v1781_v39 = vpop.f32.mrf.mxu1 }
 0x309   : > { %v1782_v40 = vadd.f32 %v2697_v38, %v1781_v39 }
 0x30b   : > { %1786 = vst [vmem:[%s437_s17] sm:$0xff] %v1782_v40  ;;  %v1788_v7 = vadd.f32 %v1782_v40, %v3217_v27 }
 0x30d   : > { %v1790_v9 = vmul.f32 0.70710677, %v1788_v7 }
 0x30f   : > { %1792 = vst [vmem:[%s3289_s22] sm:$0xff] %v1790_v9 }
 0x310   : > { %v1783_v14 = vpop.f32.mrf.mxu1 }
 0x311   : > { %v1784_v41 = vadd.f32 %v2697_v38, %v1783_v14 }
 0x313   : > { %1787 = vst [vmem:[%s437_s17 + $0x8] sm:$0xff] %v1784_v41  ;;  %v1789_v27 = vadd.f32 %v1784_v41, %v3219_v28 }
 0x314   : > { %2921 = shalt.err (!%p2918_p9)
}
 0x315   : > { %s3015_s17 = smov 128   ;;  %s3016_s28 = smov 8   ;;  %v1791_v28 = vmul.f32 0.70710677, %v1789_v27 }
 0x316   : > { %2606 = dma.vmem_to_hbm [thread:$0]  (%p3156_p13), %s1813_s13, 256, %s1815_s23, %s1795_s2, %s3015_s17, %s3015_s17, %s3016_s28  }
 0x317   : > { %1793 = vst [vmem:[%s3289_s22 + $0x8] sm:$0xff] %v1791_v28  ;;  %s1800_s26 = scalar_lea.sflag [#allocation15], %s3190_s14  ;;  %s2936_s1 = sshra.s32 %s1832_s18, 4  ;;  %s2937_s1 = int_to_ptr.hbm [resolvable:$true] %s2936_s1 }
 0x318   : > { %s2938_s16 = scalar_lea.hbm %s2937_s1, 16  ;;  %s2942_s15 = scalar_lea.hbm %s3350_s9, 32 }
 0x319   : > { %p2939_p10 = scmp.ne.s32.totalorder %s2937_s1, %s2938_s16  ;;  %p2943_p2 = scmp.lt.s32.totalorder %s2937_s1, %s3350_s9 }
 0x31a   : > { %p2944_p6 = scmp.lt.s32.totalorder %s2942_s15, %s2938_s16 }
 0x31b   : > { %p2940_p11 = pnand %p2939_p10, %p3156_p13 }
 0x31c   : > { %p2945_p1 = por %p2944_p6, %p2943_p2 }
 0x31d   : > { %p2941_p0 = pneg %p2940_p11 }
 0x31f   : > { %p2946_p3 = pnand %p2945_p1, %p2941_p0 }
 0x321   : > { %2949 = shalt.err (!%p2946_p3)
}
 0x322   : > { %2607 = dma.vmem_to_hbm [thread:$0]  (%p3156_p13), %s3296_s20, 256, %s1832_s18, %s1800_s26, %s3015_s17, %s3015_s17, %s3016_s28  }
 0x323 PF: > { %s1846_s14 = sand.u32 1, %s2992_s30   ;;  %p3369_p5 = scmp.ge.s32.totalorder %s3004_s12, 2 }
 0x324   : > { %s1847_s13 = scalar_lea.sflag [#allocation4], %s1846_s14 }
 0x325   : > { %p2631_p12 = pnand %p3369_p5, %p3161_p4 }
 0x327   : > { %p2632_p8 = pneg %p2631_p12 }
 0x329   : > { %2983 = dma.done.wait (%p2632_p8), %s1847_s13, 256  }
 0x32a   : > { %2985 = vsyncadd (%p2632_p8), %s1847_s13, 4294967040  ;;  %s1857_s0 = scalar_lea.sflag [#allocation15], %s1846_s14 }
 0x32b   : > { %2987 = dma.done.wait (%p2632_p8), %s1857_s0, 256  }
 0x32c   : > { %2989 = vsyncadd (%p2632_p8), %s1857_s0, 4294967040  ;;  %p29_p13 = scmp.ge.s32.totalorder %s3136_s21, 4   ;;  %s3370_s30 = smov %s2996_s10 }
 0x32d   : > { %s3371_s10 = smov %s3000_s11  ;;  %s3372_s11 = smov %s3148_s24 }
 0x32e   : > { %s3373_s12 = smov %s3136_s21  ;;  %31 = sbr.rel (!%p29_p13) target bundleno = 15 (0xf), region = 148 }
 0x333   :  { %1863 = vsyncpa [#allocation3], 1 }
 0x334   :  { %1865 = vsyncpa [#allocation3 + $0x1], 1 }
 0x335   :  { %1866 = vsyncpa [#allocation6], 1 }
 0x336   :  { %1867 = vsyncpa [#allocation9], 1 }
 0x337   :  { %1868 = vsyncpa [#allocation12], 1 }
 0x338   :  { %1869 = vsyncpa [#allocation4], 1 }
 0x339   :  { %1871 = vsyncpa [#allocation4 + $0x1], 1 }
 0x33a   :  { %1872 = vsyncpa [#allocation15], 1 }
 0x33b   :  { %1874 = vsyncpa [#allocation15 + $0x1], 1 }

</bundles_post_ra>
